<compile_context>
chip_gen: v7x
topology: tpu7x:2x2x1
jax: 0.10.0
libtpu: 0.0.40
codegen_flags: <defaults>
</compile_context>

<pallas_src>
import math
import jax
import jax.numpy as jnp
from jax.experimental import pallas as pl
from jax.experimental.pallas import tpu as pltpu

LANES = 128


def _round_up(x, m):
    return (x + m - 1) // m * m


# ----------------------------- Pallas kernel --------------------------------
def mlp_kernel(x_ref, w1_ref, b1_ref, w2_ref, b2_ref, w3_ref, b3_ref, o_ref):
    # hidden layer 1: Linear (bf16 operands, f32 acc) + bias + ReLU
    h = jnp.dot(x_ref[...], w1_ref[...], preferred_element_type=jnp.float32)
    h = jnp.maximum(h + b1_ref[...], 0.0)
    # hidden layer 2
    h = jnp.dot(h.astype(w2_ref.dtype), w2_ref[...],
                preferred_element_type=jnp.float32)
    h = jnp.maximum(h + b2_ref[...], 0.0)
    # output layer (lane-padded to 128 wide), no activation
    out = jnp.dot(h.astype(w3_ref.dtype), w3_ref[...],
                  preferred_element_type=jnp.float32)
    o_ref[...] = (out + b3_ref[...]).astype(o_ref.dtype)


def w2c_mlp_forward(x, params, *, block_m=128):
    """3-layer MLP classifier head as a batch-tiled Pallas TPU kernel.

    x: (B, E) embeddings (output of the wav2clip encoder).
    params: dict with bf16 pre-transposed weights w1t/w2t/w3t ((in, out),
            w3t lane-padded to 128 columns), f32 biases b1/b2/b3 ((1, out)),
            and 'classes_num' = true number of classes.
    """
    B, E = x.shape
    w1t, b1 = params["w1t"], params["b1"]
    w2t, b2 = params["w2t"], params["b2"]
    w3t, b3 = params["w3t"], params["b3"]
    C = params["classes_num"]
    Cp = w3t.shape[1]                      # lane-padded output width (128)

    # bf16 matmul operands (fast MXU path), f32 accumulation inside the kernel.
    x = x.astype(w1t.dtype)

    # Batch tile: biggest of (padded B, block_m) that keeps blocks (8,128)-legal.
    tm = min(block_m, _round_up(B, 8))
    Bp = _round_up(B, tm)
    if Bp != B:
        x = jnp.pad(x, ((0, Bp - B), (0, 0)))

    grid = (Bp // tm,)

    flops = 2 * Bp * (2 * E * E + E * Cp)
    bytes_accessed = (
        Bp * E * x.dtype.itemsize                       # activations in
        + 2 * E * E * w1t.dtype.itemsize                # hidden weights
        + E * Cp * w3t.dtype.itemsize                   # output weights
        + (2 * E + Cp) * 4                              # biases (f32)
        + Bp * Cp * 4                                   # output (f32)
    )

    out = pl.pallas_call(
        mlp_kernel,
        out_shape=jax.ShapeDtypeStruct((Bp, Cp), jnp.float32),
        grid=grid,
        in_specs=[
            pl.BlockSpec((tm, E), lambda i: (i, 0)),    # x: tiled over batch
            pl.BlockSpec((E, E), lambda i: (0, 0)),     # w1 resident
            pl.BlockSpec((1, E), lambda i: (0, 0)),     # b1 resident
            pl.BlockSpec((E, E), lambda i: (0, 0)),     # w2 resident
            pl.BlockSpec((1, E), lambda i: (0, 0)),     # b2 resident
            pl.BlockSpec((E, Cp), lambda i: (0, 0)),    # w3 resident (padded)
            pl.BlockSpec((1, Cp), lambda i: (0, 0)),    # b3 resident (padded)
        ],
        out_specs=pl.BlockSpec((tm, Cp), lambda i: (i, 0)),
        compiler_params=pltpu.CompilerParams(
            dimension_semantics=("parallel",),          # v7x: shard across 2 TCs
            vmem_limit_bytes=64 << 20,                  # plenty of headroom
        ),
        cost_estimate=pl.CostEstimate(
            flops=flops, transcendentals=0, bytes_accessed=bytes_accessed
        ),
    )(x, w1t, b1, w2t, b2, w3t, b3)

    # Slice padding away: batch padding rows and lane padding columns.
    return out[:B, :C]


# --------------------------- parameter init ----------------------------------
def xavier_uniform(key, out_features, in_features):
    # Matches torch.nn.init.xavier_uniform_ on a (out, in) Linear weight.
    bound = math.sqrt(6.0 / (in_features + out_features))
    return jax.random.uniform(
        key, (out_features, in_features), jnp.float32, minval=-bound, maxval=bound
    )


def init_params(key, embedding_sz, classes_num):
    k1, k2, k3 = jax.random.split(key, 3)
    w1 = xavier_uniform(k1, embedding_sz, embedding_sz)   # (out, in)
    w2 = xavier_uniform(k2, embedding_sz, embedding_sz)
    w3 = xavier_uniform(k3, classes_num, embedding_sz)

    cp = _round_up(classes_num, LANES)                    # lane-dense output
    w3t_pad = jnp.zeros((embedding_sz, cp), jnp.float32).at[:, :classes_num].set(w3.T)

    return {
        # pre-transposed to (in, out); bf16 operands for the MXU fast path
        "w1t": w1.T.astype(jnp.bfloat16),
        "b1": jnp.zeros((1, embedding_sz), jnp.float32),   # biases init to 0.0
        "w2t": w2.T.astype(jnp.bfloat16),
        "b2": jnp.zeros((1, embedding_sz), jnp.float32),
        "w3t": w3t_pad.astype(jnp.bfloat16),
        "b3": jnp.zeros((1, cp), jnp.float32),
        "classes_num": classes_num,
    }


# ------------------------------ reference ------------------------------------
def mlp_reference(x, params):
    # Mirrors the kernel math exactly: bf16 operands, f32 accumulation.
    xb = x.astype(params["w1t"].dtype)
    h = jnp.dot(xb, params["w1t"], preferred_element_type=jnp.float32)
    h = jnp.maximum(h + params["b1"], 0.0)
    h = jnp.dot(h.astype(params["w2t"].dtype), params["w2t"],
                preferred_element_type=jnp.float32)
    h = jnp.maximum(h + params["b2"], 0.0)
    out = jnp.dot(h.astype(params["w3t"].dtype), params["w3t"],
                  preferred_element_type=jnp.float32) + params["b3"]
    return out[:, :params["classes_num"]]


# --------------------------------- main ---------------------------------------
if __name__ == "__main__":
    # Module defaults: embedding_sz=512, classes_num=11, num_layers=3.
    batch = 32             # small test batch
    embedding_sz = 512
    classes_num = 11

    key = jax.random.PRNGKey(0)
    k_x, k_p = jax.random.split(key)

    # Stand-in for the wav2clip encoder output: (B, embedding_sz) embeddings.
    x = jax.random.normal(k_x, (batch, embedding_sz), jnp.float32)
    params = init_params(k_p, embedding_sz, classes_num)

    # block_m=16 -> 2 batch tiles, exercises the pipelined grid path.
    out = w2c_mlp_forward(x, params, block_m=16)
    out = jax.block_until_ready(out)

    ref = mlp_reference(x, params)
    assert out.shape == (batch, classes_num), out.shape
    assert jnp.allclose(out, ref, atol=1e-2, rtol=1e-2), float(
        jnp.max(jnp.abs(out - ref))
    )

    print("KERNEL_OK")
</pallas_src>

<mosaic_0001>
module attributes {stable_mosaic.version = 11 : i64} {
  func.func @mlp_kernel(%arg0: i32, %arg1: memref<16x512xbf16, #tpu.memory_space<vmem>>, %arg2: memref<512x512xbf16, #tpu.memory_space<vmem>>, %arg3: memref<1x512xf32, #tpu.memory_space<vmem>>, %arg4: memref<512x512xbf16, #tpu.memory_space<vmem>>, %arg5: memref<1x512xf32, #tpu.memory_space<vmem>>, %arg6: memref<512x128xbf16, #tpu.memory_space<vmem>>, %arg7: memref<1x128xf32, #tpu.memory_space<vmem>>, %arg8: memref<16x128xf32, #tpu.memory_space<vmem>>) attributes {dimension_semantics = [#tpu.dimension_semantics<parallel>], iteration_bounds = array<i64: 2>, scalar_prefetch = 0 : i64, scratch_operands = 0 : i64, tpu.core_type = #tpu.core_type<tc>, window_params = [{transform_indices = @transform_0, window_bounds = array<i64: 16, 512>}, {pipeline_mode = #tpu.pipeline_mode<synchronous>, transform_indices = @transform_1, window_bounds = array<i64: 512, 512>}, {pipeline_mode = #tpu.pipeline_mode<synchronous>, transform_indices = @transform_2, window_bounds = array<i64: 1, 512>}, {pipeline_mode = #tpu.pipeline_mode<synchronous>, transform_indices = @transform_3, window_bounds = array<i64: 512, 512>}, {pipeline_mode = #tpu.pipeline_mode<synchronous>, transform_indices = @transform_4, window_bounds = array<i64: 1, 512>}, {pipeline_mode = #tpu.pipeline_mode<synchronous>, transform_indices = @transform_5, window_bounds = array<i64: 512, 128>}, {pipeline_mode = #tpu.pipeline_mode<synchronous>, transform_indices = @transform_6, window_bounds = array<i64: 1, 128>}, {transform_indices = @transform_7, window_bounds = array<i64: 16, 128>}]} {
    %c0 = arith.constant 0 : index
    %c0_0 = arith.constant 0 : index
    %0 = vector.load %arg1[%c0, %c0_0] : memref<16x512xbf16, #tpu.memory_space<vmem>>, vector<16x512xbf16>
    %c0_1 = arith.constant 0 : index
    %c0_2 = arith.constant 0 : index
    %1 = vector.load %arg2[%c0_1, %c0_2] : memref<512x512xbf16, #tpu.memory_space<vmem>>, vector<512x512xbf16>
    %cst = arith.constant dense<0.000000e+00> : vector<16x512xf32>
    %2 = tpu.matmul %0, %1, %cst {dimension_numbers = #tpu.dot_dimension_numbers<[1], [0], [0], [1], [0, 0, 1, 1], [], []>} : vector<16x512xbf16>, vector<512x512xbf16>, vector<16x512xf32> -> vector<16x512xf32>
    %c0_3 = arith.constant 0 : index
    %c0_4 = arith.constant 0 : index
    %3 = vector.load %arg3[%c0_3, %c0_4] : memref<1x512xf32, #tpu.memory_space<vmem>>, vector<1x512xf32>
    %4 = vector.broadcast %3 : vector<1x512xf32> to vector<16x512xf32>
    %5 = arith.addf %2, %4 : vector<16x512xf32>
    %cst_5 = arith.constant 0.000000e+00 : f32
    %6 = vector.broadcast %cst_5 : f32 to vector<16x512xf32>
    %7 = arith.maximumf %5, %6 : vector<16x512xf32>
    %8 = arith.truncf %7 : vector<16x512xf32> to vector<16x512xbf16>
    %c0_6 = arith.constant 0 : index
    %c0_7 = arith.constant 0 : index
    %9 = vector.load %arg4[%c0_6, %c0_7] : memref<512x512xbf16, #tpu.memory_space<vmem>>, vector<512x512xbf16>
    %cst_8 = arith.constant dense<0.000000e+00> : vector<16x512xf32>
    %10 = tpu.matmul %8, %9, %cst_8 {dimension_numbers = #tpu.dot_dimension_numbers<[1], [0], [0], [1], [0, 0, 1, 1], [], []>} : vector<16x512xbf16>, vector<512x512xbf16>, vector<16x512xf32> -> vector<16x512xf32>
    %c0_9 = arith.constant 0 : index
    %c0_10 = arith.constant 0 : index
    %11 = vector.load %arg5[%c0_9, %c0_10] : memref<1x512xf32, #tpu.memory_space<vmem>>, vector<1x512xf32>
    %12 = vector.broadcast %11 : vector<1x512xf32> to vector<16x512xf32>
    %13 = arith.addf %10, %12 : vector<16x512xf32>
    %cst_11 = arith.constant 0.000000e+00 : f32
    %14 = vector.broadcast %cst_11 : f32 to vector<16x512xf32>
    %15 = arith.maximumf %13, %14 : vector<16x512xf32>
    %16 = arith.truncf %15 : vector<16x512xf32> to vector<16x512xbf16>
    %c0_12 = arith.constant 0 : index
    %c0_13 = arith.constant 0 : index
    %17 = vector.load %arg6[%c0_12, %c0_13] : memref<512x128xbf16, #tpu.memory_space<vmem>>, vector<512x128xbf16>
    %cst_14 = arith.constant dense<0.000000e+00> : vector<16x128xf32>
    %18 = tpu.matmul %16, %17, %cst_14 {dimension_numbers = #tpu.dot_dimension_numbers<[1], [0], [0], [1], [0, 0, 1, 1], [], []>} : vector<16x512xbf16>, vector<512x128xbf16>, vector<16x128xf32> -> vector<16x128xf32>
    %c0_15 = arith.constant 0 : index
    %c0_16 = arith.constant 0 : index
    %19 = vector.load %arg7[%c0_15, %c0_16] : memref<1x128xf32, #tpu.memory_space<vmem>>, vector<1x128xf32>
    %20 = vector.broadcast %19 : vector<1x128xf32> to vector<16x128xf32>
    %21 = arith.addf %18, %20 : vector<16x128xf32>
    %c0_17 = arith.constant 0 : index
    %c0_18 = arith.constant 0 : index
    %22 = vector.load %arg8[%c0_17, %c0_18] : memref<16x128xf32, #tpu.memory_space<vmem>>, vector<16x128xf32>
    tpu.vector_store %arg8[%c0_17, %c0_18], %21 {strides = array<i32>} : memref<16x128xf32, #tpu.memory_space<vmem>>, vector<16x128xf32>,
    return
  }
  func.func @transform_0(%arg0: i32) -> (i32, i32) {
    %c0_i32 = arith.constant 0 : i32
    %c0_i32_0 = arith.constant 0 : i32
    return %arg0, %c0_i32 : i32, i32
  }
  func.func @transform_1(%arg0: i32) -> (i32, i32) {
    %c0_i32 = arith.constant 0 : i32
    %c0_i32_0 = arith.constant 0 : i32
    %c0_i32_1 = arith.constant 0 : i32
    return %c0_i32, %c0_i32_0 : i32, i32
  }
  func.func @transform_2(%arg0: i32) -> (i32, i32) {
    %c0_i32 = arith.constant 0 : i32
    %c0_i32_0 = arith.constant 0 : i32
    %c0_i32_1 = arith.constant 0 : i32
    return %c0_i32, %c0_i32_0 : i32, i32
  }
  func.func @transform_3(%arg0: i32) -> (i32, i32) {
    %c0_i32 = arith.constant 0 : i32
    %c0_i32_0 = arith.constant 0 : i32
    %c0_i32_1 = arith.constant 0 : i32
    return %c0_i32, %c0_i32_0 : i32, i32
  }
  func.func @transform_4(%arg0: i32) -> (i32, i32) {
    %c0_i32 = arith.constant 0 : i32
    %c0_i32_0 = arith.constant 0 : i32
    %c0_i32_1 = arith.constant 0 : i32
    return %c0_i32, %c0_i32_0 : i32, i32
  }
  func.func @transform_5(%arg0: i32) -> (i32, i32) {
    %c0_i32 = arith.constant 0 : i32
    %c0_i32_0 = arith.constant 0 : i32
    %c0_i32_1 = arith.constant 0 : i32
    return %c0_i32, %c0_i32_0 : i32, i32
  }
  func.func @transform_6(%arg0: i32) -> (i32, i32) {
    %c0_i32 = arith.constant 0 : i32
    %c0_i32_0 = arith.constant 0 : i32
    %c0_i32_1 = arith.constant 0 : i32
    return %c0_i32, %c0_i32_0 : i32, i32
  }
  func.func @transform_7(%arg0: i32) -> (i32, i32) {
    %c0_i32 = arith.constant 0 : i32
    %c0_i32_0 = arith.constant 0 : i32
    return %arg0, %c0_i32 : i32, i32
  }
}

</mosaic_0001>

<bundles_post_ra>
// kernel: tpu_custom_call.1
= control target key start
LH: loop header
LB: loop body
LE: loop exit
PB: predicated region body
PF: predicated region fallthrough
CT: control target
= control target key end

     0   :  { %s4478_s0 = inlined_call_operand.hbm [shape: bf16[32,512], index: 0, kind: input, shape index: {}]   ;;  %s4479_s1 = inlined_call_operand.hbm [shape: bf16[512,512], index: 1, kind: input, shape index: {}]   ;;  %s4480_s2 = inlined_call_operand.hbm [shape: f32[1,512], index: 2, kind: input, shape index: {}]   ;;  %s4481_s3 = inlined_call_operand.hbm [shape: bf16[512,512], index: 3, kind: input, shape index: {}]   ;;  %s4482_s4 = inlined_call_operand.hbm [shape: f32[1,512], index: 4, kind: input, shape index: {}]   ;;  %s4483_s5 = inlined_call_operand.hbm [shape: bf16[512,128], index: 5, kind: input, shape index: {}]   ;;  %s4484_s6 = inlined_call_operand.hbm [shape: f32[1,128], index: 6, kind: input, shape index: {}]   ;;  %s4485_s7 = inlined_call_operand.hbm [shape: f32[32,128], index: 7, kind: output, shape index: {}]  }
   0x1   :  { %4491 = sst [smem:[#allocation20_spill]] %s4479_s1 }
   0x2   :  { %12 = vsyncpa [#allocation3], 0 }
   0x3   :  { %14 = vsyncpa [#allocation3 + $0x1], 0 }
   0x4   :  { %15 = vsyncpa [#allocation6], 0 }
   0x5   :  { %16 = vsyncpa [#allocation9], 0 }
   0x6   :  { %17 = vsyncpa [#allocation12], 0 }
   0x7   :  { %18 = vsyncpa [#allocation4], 0 }
   0x8   :  { %20 = vsyncpa [#allocation4 + $0x1], 0  ;;  %s4111_s24 = smov 0   ;;  %s4113_s25 = smov 0  }
   0x9   :  { %s4115_s26 = smov 0   ;;  %s4117_s27 = smov 0  }
   0xa LB: > { %s4057_s28 = smov [#allocation5]   ;;  %s4132_s30 = sadd.s32 4294967295, %s4055_s27   ;;  %s4055_s27 = sphi %s4117_s27, %s4517_s27   ;;  %s4051_s26 = sphi %s4115_s26, %s4516_s26   ;;  %s4047_s25 = sphi %s4113_s25, %s4515_s25   ;;  %s4043_s24 = sphi %s4111_s24, %s4514_s24  }
   0xb   : > { %s221_s29 = sshll.u32 %s4057_s28, 4  ;;  %p2846_p0 = scmp.ge.s32.totalorder %s4055_s27, 1  ;;  %s4137_s29 = int_to_ptr.vmem [resolvable:$true] %s221_s29 }
   0xc   : > { %p4488_p1 = scmp.eq.s32.totalorder %s4132_s30, 0  ;;  %p209_p2 = scmp.lt.s32.totalorder %s4055_s27, 3 }
   0xd   : > { %s4058_s9 = smov [#allocation8]   ;;  %s4059_s12 = smov [#allocation11]  }
   0xe   : > { %p4139_p3 = pnand %p2846_p0, %p209_p2  ;;  %s245_s10 = sshll.u32 %s4058_s9, 4  ;;  %s4152_s10 = int_to_ptr.vmem [resolvable:$true] %s245_s10 }
   0xf   : > { %s269_s13 = sshll.u32 %s4059_s12, 4  ;;  %s4494_s1 = sld [smem:[#allocation20_spill]]  ;;  %s4154_s13 = int_to_ptr.vmem [resolvable:$true] %s269_s13 }
  0x10   : > { %s4492_s8 = scalar_select %p4139_p3, 1, 0 }
  0x11   : > { %p3272_p5 = pneg %p4139_p3 }
  0x13   : > { %p4148_p6 = pnand %p3272_p5, %p4488_p1 }
  0x15   : > { %s3779_s16 = scalar_lea.hbm %s4494_s1, 16384  ;;  %p4164_p8 = pneg %p4148_p6 }
  0x16   : > { %p3780_p7 = scmp.ne.s32.totalorder %s4494_s1, %s3779_s16  ;;  %p3786_p11 = scmp.lt.u32.totalorder %s3779_s16, %s4494_s1 }
  0x18   : > { %p3782_p9 = pnand %p4164_p8, %p3780_p7 }
  0x1a   : > { %p3783_p10 = pneg %p3782_p9 }
  0x1c   : > { %p3788_p12 = pnand %p3786_p11, %p3783_p10 }
  0x1e   : > { %3791 = shalt.err (!%p3788_p12)
}
  0x1f   : > { %s3792_s22 = scalar_lea.vmem %s4137_s29, 16384  ;;  %p3800_p5 = scmp.lt.s32.totalorder %s4137_s29, %s4137_s29 }
  0x20   : > { %p3793_p13 = scmp.ne.s32.totalorder %s4137_s29, %s3792_s22  ;;  %p3801_p4 = scmp.lt.s32.totalorder %s3792_s22, %s3792_s22 }
  0x22   : > { %p3795_p0 = pnand %p3793_p13, %p4164_p8  ;;  %p3802_p7 = por %p3801_p4, %p3800_p5 }
  0x24   : > { %p3796_p2 = pneg %p3795_p0 }
  0x26   : > { %p3803_p9 = pnand %p3802_p7, %p3796_p2 }
  0x28   : > { %3806 = shalt.err (!%p3803_p9)
}
  0x29   : > { %s4486_s23 = smov 256   ;;  %s4487_s28 = smov 16  }
  0x2a   : > { %3275 = dma.hbm_to_vmem [thread:$0]  (!%p4148_p6), %s4494_s1, 16384, %s4137_s29, [#allocation6], %s4486_s23, %s4486_s23, %s4487_s28  }
  0x2b   : > { %s3807_s16 = scalar_lea.hbm %s4481_s3, 16384 }
  0x2c   : > { %p3808_p4 = scmp.ne.s32.totalorder %s4481_s3, %s3807_s16  ;;  %p3814_p12 = scmp.lt.u32.totalorder %s3807_s16, %s4481_s3 }
  0x2e   : > { %p3810_p10 = pnand %p3808_p4, %p4164_p8 }
  0x30   : > { %p3811_p11 = pneg %p3810_p10 }
  0x32   : > { %p3816_p13 = pnand %p3814_p12, %p3811_p11 }
  0x34   : > { %3819 = shalt.err (!%p3816_p13)
}
  0x35   : > { %s3820_s29 = scalar_lea.vmem %s4152_s10, 16384  ;;  %p3828_p7 = scmp.lt.s32.totalorder %s4152_s10, %s4152_s10 }
  0x36   : > { %p3821_p0 = scmp.ne.s32.totalorder %s4152_s10, %s3820_s29  ;;  %p3829_p9 = scmp.lt.s32.totalorder %s3820_s29, %s3820_s29 }
  0x38   : > { %p3823_p2 = pnand %p3821_p0, %p4164_p8  ;;  %p3830_p4 = por %p3829_p9, %p3828_p7 }
  0x3a   : > { %p3824_p5 = pneg %p3823_p2 }
  0x3c   : > { %p3831_p10 = pnand %p3830_p4, %p3824_p5 }
  0x3e   : > { %3834 = shalt.err (!%p3831_p10)
}
  0x3f   : > { %3281 = dma.hbm_to_vmem [thread:$0]  (!%p4148_p6), %s4481_s3, 16384, %s4152_s10, [#allocation9], %s4486_s23, %s4486_s23, %s4487_s28  }
  0x40   : > { %s3835_s15 = scalar_lea.hbm %s4483_s5, 4096 }
  0x41   : > { %p3836_p11 = scmp.ne.s32.totalorder %s4483_s5, %s3835_s15  ;;  %p3842_p0 = scmp.lt.u32.totalorder %s3835_s15, %s4483_s5 }
  0x43   : > { %p3838_p12 = pnand %p3836_p11, %p4164_p8 }
  0x45   : > { %p3839_p13 = pneg %p3838_p12 }
  0x47   : > { %p3844_p2 = pnand %p3842_p0, %p3839_p13 }
  0x49   : > { %3847 = shalt.err (!%p3844_p2)
}
  0x4a   : > { %s3848_s10 = scalar_lea.vmem %s4154_s13, 4096  ;;  %p3856_p4 = scmp.lt.s32.totalorder %s4154_s13, %s4154_s13 }
  0x4b   : > { %p3849_p5 = scmp.ne.s32.totalorder %s4154_s13, %s3848_s10  ;;  %p3857_p10 = scmp.lt.s32.totalorder %s3848_s10, %s3848_s10 }
  0x4d   : > { %p3851_p7 = pnand %p3849_p5, %p4164_p8  ;;  %p3858_p11 = por %p3857_p10, %p3856_p4 }
  0x4f   : > { %p3852_p9 = pneg %p3851_p7 }
  0x51   : > { %p3859_p12 = pnand %p3858_p11, %p3852_p9 }
  0x53   : > { %3862 = shalt.err (!%p3859_p12)
}
  0x54   : > { %s4062_s21 = smov 64   ;;  %s4063_s29 = smov 4  }
  0x55   : > { %3287 = dma.hbm_to_vmem [thread:$0]  (!%p4148_p6), %s4483_s5, 4096, %s4154_s13, [#allocation12], %s4062_s21, %s4062_s21, %s4063_s29  }
  0x56   : > { %s4064_s12 = smov [#allocation7]   ;;  %s4065_s15 = smov [#allocation10]  }
  0x57   : > { %s235_s14 = sshll.u32 %s4064_s12, 4  ;;  %s259_s16 = sshll.u32 %s4065_s15, 4  ;;  %s236_s14 = int_to_ptr.vmem [resolvable:$true] %s235_s14  ;;  %s260_s16 = int_to_ptr.vmem [resolvable:$true] %s259_s16 }
  0x58   : > { %s3863_s20 = scalar_lea.hbm %s4480_s2, 64 }
  0x59   : > { %p3864_p13 = scmp.ne.s32.totalorder %s4480_s2, %s3863_s20  ;;  %p3870_p5 = scmp.lt.u32.totalorder %s3863_s20, %s4480_s2 }
  0x5b   : > { %p3866_p0 = pnand %p3864_p13, %p4164_p8 }
  0x5d   : > { %p3867_p2 = pneg %p3866_p0 }
  0x5f   : > { %p3872_p7 = pnand %p3870_p5, %p3867_p2 }
  0x61   : > { %3875 = shalt.err (!%p3872_p7)
}
  0x62   : > { %s3876_s13 = scalar_lea.vmem %s236_s14, 64  ;;  %p3884_p11 = scmp.lt.s32.totalorder %s236_s14, %s236_s14 }
  0x63   : > { %p3877_p9 = scmp.ne.s32.totalorder %s236_s14, %s3876_s13  ;;  %p3885_p12 = scmp.lt.s32.totalorder %s3876_s13, %s3876_s13 }
  0x65   : > { %p3879_p4 = pnand %p3877_p9, %p4164_p8  ;;  %p3886_p1 = por %p3885_p12, %p3884_p11 }
  0x67   : > { %p3880_p10 = pneg %p3879_p4 }
  0x69   : > { %p3887_p3 = pnand %p3886_p1, %p3880_p10 }
  0x6b   : > { %3890 = shalt.err (!%p3887_p3)
}
  0x6c   : > { %3278 = dma.hbm_to_vmem [thread:$0]  (!%p4148_p6), %s4480_s2, 64, %s236_s14, [#allocation6]  }
  0x6d   : > { %s3891_s29 = scalar_lea.hbm %s4482_s4, 64 }
  0x6e   : > { %p3892_p13 = scmp.ne.s32.totalorder %s4482_s4, %s3891_s29  ;;  %p3898_p3 = scmp.lt.u32.totalorder %s3891_s29, %s4482_s4 }
  0x70   : > { %p3894_p0 = pnand %p3892_p13, %p4164_p8 }
  0x72   : > { %p3895_p1 = pneg %p3894_p0 }
  0x74   : > { %p3900_p2 = pnand %p3898_p3, %p3895_p1 }
  0x76   : > { %3903 = shalt.err (!%p3900_p2)
}
  0x77   : > { %s3904_s17 = scalar_lea.vmem %s260_s16, 64  ;;  %p3912_p4 = scmp.lt.s32.totalorder %s260_s16, %s260_s16 }
  0x78   : > { %p3905_p5 = scmp.ne.s32.totalorder %s260_s16, %s3904_s17  ;;  %p3913_p10 = scmp.lt.s32.totalorder %s3904_s17, %s3904_s17 }
  0x7a   : > { %p3907_p7 = pnand %p3905_p5, %p4164_p8  ;;  %p3914_p11 = por %p3913_p10, %p3912_p4 }
  0x7c   : > { %p3908_p9 = pneg %p3907_p7 }
  0x7e   : > { %p3915_p12 = pnand %p3914_p11, %p3908_p9 }
  0x80   : > { %3918 = shalt.err (!%p3915_p12)
}
  0x81   : > { %3284 = dma.hbm_to_vmem [thread:$0]  (!%p4148_p6), %s4482_s4, 64, %s260_s16, [#allocation9]  }
  0x82   : > { %s4066_s20 = smov [#allocation13]   ;;  %s3919_s21 = scalar_lea.hbm %s4484_s6, 16 }
  0x83   : > { %s283_s10 = sshll.u32 %s4066_s20, 4  ;;  %p3920_p13 = scmp.ne.s32.totalorder %s4484_s6, %s3919_s21  ;;  %s284_s10 = int_to_ptr.vmem [resolvable:$true] %s283_s10 }
  0x84   : > { %p3926_p3 = scmp.lt.u32.totalorder %s3919_s21, %s4484_s6 }
  0x85   : > { %p3922_p0 = pnand %p3920_p13, %p4164_p8 }
  0x87   : > { %p3923_p1 = pneg %p3922_p0 }
  0x89   : > { %p3928_p2 = pnand %p3926_p3, %p3923_p1 }
  0x8b   : > { %3931 = shalt.err (!%p3928_p2)
}
  0x8c   : > { %s3932_s16 = scalar_lea.vmem %s284_s10, 16  ;;  %s3939_s9 = scalar_lea.vmem %s284_s10, 32 }
  0x8d   : > { %p3933_p5 = scmp.ne.s32.totalorder %s284_s10, %s3932_s16  ;;  %p3940_p4 = scmp.lt.s32.totalorder %s284_s10, %s284_s10 }
  0x8e   : > { %p3941_p10 = scmp.lt.s32.totalorder %s3939_s9, %s3932_s16 }
  0x8f   : > { %p3935_p7 = pnand %p3933_p5, %p4164_p8 }
  0x90   : > { %p3942_p11 = por %p3941_p10, %p3940_p4 }
  0x91   : > { %p3936_p9 = pneg %p3935_p7 }
  0x93   : > { %p3943_p12 = pnand %p3942_p11, %p3936_p9 }
  0x95   : > { %3946 = shalt.err (!%p3943_p12)
}
  0x96   : > { %3290 = dma.hbm_to_vmem [thread:$0]  (!%p4148_p6), %s4484_s6, 16, %s284_s10, [#allocation12]  }
  0x97   : > { %s2845_s19 = sadd.s32 4294967294, %s4055_s27   ;;  %s4293_s11 = sadd.s32 1, %s4055_s27  }
  0x98   : > { %s30_s17 = ssub.s32 %s4055_s27, %s4293_s11  ;;  %s33_s14 = sadd.s32 1, %s4051_s26 }
  0x99   : > { %p31_p8 = scmp.eq.s32.totalorder %s30_s17, 0  ;;  %p40_p13 = scmp.ne.s32.totalorder %s4051_s26, %s4047_s25 }
  0x9a   : > { %p41_p0 = scmp.eq.s32.totalorder %s4055_s27, 0  ;;  %p46_p1 = scmp.ne.s32.totalorder %s4047_s25, %s4043_s24 }
  0x9b   : > { %s4304_s18 = scalar_select %p31_p8, %s4051_s26, %s33_s14  }
  0x9c   : > { %p4306_p3 = por %p41_p0, %p40_p13  ;;  %p4497_p2 = scmp.eq.s32.totalorder %s4132_s30, 0 }
  0x9d   : > { %p196_p5 = scmp.eq.s32.totalorder %s4132_s30, 1  ;;  %p202_p7 = scmp.eq.s32.totalorder %s2845_s19, 1 }
  0x9e   : > { %p4312_p6 = por %p4497_p2, %p46_p1  ;;  %p3305_p9 = scmp.lt.s32.totalorder %s4055_s27, 2 }
  0x9f   : > { %s294_s13 = sand.u32 1, %s4051_s26   ;;  %p4319_p4 = por %p196_p5, %p40_p13 }
  0xa0   : > { %p4323_p10 = por %p202_p7, %p46_p1  ;;  %s2854_s1 = sshll.u32 %s294_s13, 5 }
  0xa1   : > { %s4499_s23 = scalar_select %p4319_p4, 1, 0 }
  0xa2   : > { %s4500_s21 = scalar_select %p4323_p10, 1, 0 }
  0xa3   : > { %s3166_s28 = sshll.u32 %s4055_s27, 9  ;;  %s298_s9 = scalar_lea.vmem [#allocation2], %s2854_s1 }
  0xa4   : > { %s4331_s16 = scalar_lea.hbm %s4478_s0, %s3166_s28  ;;  %s306_s12 = sshll.u32 %s298_s9, 4  ;;  %s4333_s12 = int_to_ptr.vmem [resolvable:$true] %s306_s12 }
  0xa5   : > { %p4337_p11 = pnand %p3305_p9, %p4306_p3  ;;  %s4341_s19 = scalar_lea.sflag [#allocation3], %s294_s13 }
  0xa6   : > { %s3947_s17 = scalar_lea.hbm %s4331_s16, 512  ;;  %s3952_s20 = scalar_lea.hbm %s4478_s0, 1024 }
  0xa7   : > { %p3948_p12 = scmp.ne.s32.totalorder %s4331_s16, %s3947_s17  ;;  %p3949_p8 = pneg %p4337_p11 }
  0xa8   : > { %p3953_p1 = scmp.lt.u32.totalorder %s4331_s16, %s4478_s0  ;;  %p3954_p3 = scmp.lt.u32.totalorder %s3952_s20, %s3947_s17 }
  0xa9   : > { %p3950_p13 = pnand %p3949_p8, %p3948_p12  ;;  %p3956_p5 = scmp.lt.u32.totalorder %s3947_s17, %s4331_s16 }
  0xaa   : > { %p3955_p2 = por %p3954_p3, %p3953_p1 }
  0xab   : > { %p3951_p0 = pneg %p3950_p13 }
  0xac   : > { %p3957_p7 = por %p3956_p5, %p3955_p2 }
  0xae   : > { %p3958_p9 = pnand %p3957_p7, %p3951_p0 }
  0xb0   : > { %3961 = shalt.err (!%p3958_p9)
}
  0xb1   : > { %s3962_s13 = scalar_lea.vmem %s4333_s12, 512  ;;  %s4067_s22 = smov [#allocation2]  }
  0xb2   : > { %p3963_p12 = scmp.ne.s32.totalorder %s4333_s12, %s3962_s13  ;;  %s3967_s9 = sshll.u32 %s4067_s22, 4  ;;  %s3968_s9 = int_to_ptr.vmem [resolvable:$false] %s3967_s9 }
  0xb3   : > { %s3969_s14 = scalar_lea.vmem %s3968_s9, 1024  ;;  %p3970_p4 = scmp.lt.s32.totalorder %s4333_s12, %s3968_s9 }
  0xb4   : > { %p3965_p13 = pnand %p3963_p12, %p3949_p8  ;;  %p3971_p1 = scmp.lt.s32.totalorder %s3969_s14, %s3962_s13 }
  0xb6   : > { %p3966_p10 = pneg %p3965_p13  ;;  %p3972_p3 = por %p3971_p1, %p3970_p4 }
  0xb8   : > { %p3973_p2 = pnand %p3972_p3, %p3966_p10 }
  0xba   : > { %3976 = shalt.err (!%p3973_p2)
}
  0xbb   : > { %s4502_s17 = smov 16   ;;  %s4503_s1 = smov 256  }
  0xbc   : > { %3294 = dma.hbm_to_vmem [thread:$0]  (!%p4337_p11), %s4331_s16, 512, %s4333_s12, %s4341_s19, %s4503_s1, %s4503_s1, %s4502_s17  }
  0xbd   : > { %p4504_p8 = scmp.ne.s32.totalorder %s4492_s8, 0 }
  0xbe   : > { %s4375_s20 = sand.u32 (!%p4504_p8), 1, %s4047_s25  }
  0xbf   : > { %318 = sbr.rel (%p4504_p8) target bundleno = 1082 (0x43a), region = 48  ;;  %s2859_s28 = sshll.u32 (!%p4504_p8), %s4375_s20, 5 }
  0xc0   : > { %s321_s29 = scalar_lea.sflag (!%p4504_p8), [#allocation3], %s4375_s20  ;;  %s4379_s13 = scalar_lea.vmem (!%p4504_p8), [#allocation2], %s2859_s28 }
  0xc6   : > { %4022 = dma.done.wait (%p4312_p6), %s321_s29, 512  }
  0xc7   : > { %4024 = vsyncadd (%p4312_p6), %s321_s29, 4294966784  ;;  %p4505_p4 = scmp.eq.s32.totalorder %s4132_s30, 0 }
  0xc9   : > { %4026 = dma.done.wait (%p4505_p4), [#allocation6], 16448   ;;  %p4506_p10 = pmov %p4505_p4 }
  0xca   : > { %p4507_p11 = pmov %p4505_p4 }
  0xcb   : > { %4028 = vsyncadd (%p4506_p10), [#allocation6], 4294950848 }
  0xcc   : > { %4030 = dma.done.wait (%p4507_p11), [#allocation9], 16448   ;;  %p4508_p0 = pmov %p4505_p4 }
  0xce   : > { %4032 = vsyncadd (%p4508_p0), [#allocation9], 4294950848  ;;  %p4509_p5 = pmov %p4508_p0 }
  0xcf   : > { %p4510_p7 = pmov %p4508_p0 }
  0xd0   : > { %4034 = dma.done.wait (%p4509_p5), [#allocation12], 4112  }
  0xd1   : > { %4036 = vsyncadd (%p4510_p7), [#allocation12], 4294963184  ;;  %v3357_v0 = vld [vmem:[#allocation5 + $0x4] ss:$16 sps:$4 sm:$0xff]   ;;  %v3359_v1 = vld [vmem:[#allocation5 + $0xc] ss:$16 sps:$4 sm:$0xff]  }
  0xd2   : > { %1196 = vmatprep.subr.bf16.mxu0 %v3357_v0  ;;  %v3361_v2 = vld [vmem:[#allocation5] ss:$16 sps:$4 sm:$0xff]   ;;  %v3362_v3 = vld [vmem:[#allocation5 + $0x8] ss:$16 sps:$4 sm:$0xff]   ;;  %1282 = vmatprep.subr.bf16.mxu1 %v3359_v1  ;;  %v3363_v4 = vld [vmem:[#allocation5 + $0x24] ss:$16 sps:$4 sm:$0xff]  }
  0xd3   : > { %1197 = vmatpush1.bf16.msra.mxu0 %v3361_v2  ;;  %1283 = vmatpush1.bf16.msra.mxu1 %v3362_v3  ;;  %v3365_v5 = vld [vmem:[#allocation5 + $0x2c] ss:$16 sps:$4 sm:$0xff]   ;;  %v3367_v6 = vld [vmem:[#allocation5 + $0x20] ss:$16 sps:$4 sm:$0xff]   ;;  %v3368_v7 = vld [vmem:[#allocation5 + $0x28] ss:$16 sps:$4 sm:$0xff]  }
  0xd4   : > { %1198 = vmatprep.subr.bf16.mxu0 %v3363_v4  ;;  %1284 = vmatprep.subr.bf16.mxu1 %v3365_v5  ;;  %v3369_v8 = vld [vmem:[#allocation5 + $0x44] ss:$16 sps:$4 sm:$0xff]   ;;  %v3371_v9 = vld [vmem:[#allocation5 + $0x4c] ss:$16 sps:$4 sm:$0xff]   ;;  %v3373_v10 = vld [vmem:[#allocation5 + $0x40] ss:$16 sps:$4 sm:$0xff]  }
  0xd5   : > { %v3374_v11 = vld [vmem:[#allocation5 + $0x48] ss:$16 sps:$4 sm:$0xff]   ;;  %v3375_v12 = vld [vmem:[#allocation5 + $0x64] ss:$16 sps:$4 sm:$0xff]   ;;  %v3377_v13 = vld [vmem:[#allocation5 + $0x6c] ss:$16 sps:$4 sm:$0xff]  }
  0xd6   : > { %v3379_v14 = vld [vmem:[#allocation5 + $0x60] ss:$16 sps:$4 sm:$0xff]   ;;  %v3380_v15 = vld [vmem:[#allocation5 + $0x68] ss:$16 sps:$4 sm:$0xff]   ;;  %v3381_v16 = vld [vmem:[#allocation5 + $0x84] ss:$16 sps:$4 sm:$0xff]  }
  0xd7   : > { %1199 = vmatpush1.bf16.msra.mxu0 %v3367_v6  ;;  %1285 = vmatpush1.bf16.msra.mxu1 %v3368_v7  ;;  %v3383_v17 = vld [vmem:[#allocation5 + $0x8c] ss:$16 sps:$4 sm:$0xff]   ;;  %v3385_v18 = vld [vmem:[#allocation5 + $0x80] ss:$16 sps:$4 sm:$0xff]   ;;  %v3386_v19 = vld [vmem:[#allocation5 + $0x88] ss:$16 sps:$4 sm:$0xff]  }
  0xd8   : > { %1200 = vmatprep.subr.bf16.mxu0 %v3369_v8  ;;  %1286 = vmatprep.subr.bf16.mxu1 %v3371_v9  ;;  %v3387_v20 = vld [vmem:[#allocation5 + $0xa4] ss:$16 sps:$4 sm:$0xff]   ;;  %v3389_v21 = vld [vmem:[#allocation5 + $0xac] ss:$16 sps:$4 sm:$0xff]   ;;  %v3391_v22 = vld [vmem:[#allocation5 + $0xa0] ss:$16 sps:$4 sm:$0xff]  }
  0xd9   : > { %v3392_v23 = vld [vmem:[#allocation5 + $0xa8] ss:$16 sps:$4 sm:$0xff]   ;;  %v3393_v24 = vld [vmem:[#allocation5 + $0xc4] ss:$16 sps:$4 sm:$0xff]   ;;  %v3395_v25 = vld [vmem:[#allocation5 + $0xcc] ss:$16 sps:$4 sm:$0xff]  }
  0xda   : > { %v3397_v26 = vld [vmem:[#allocation5 + $0xc0] ss:$16 sps:$4 sm:$0xff]   ;;  %v3398_v27 = vld [vmem:[#allocation5 + $0xc8] ss:$16 sps:$4 sm:$0xff]   ;;  %v3399_v28 = vld [vmem:[#allocation5 + $0xe4] ss:$16 sps:$4 sm:$0xff]  }
  0xdb   : > { %1201 = vmatpush1.bf16.msra.mxu0 %v3373_v10  ;;  %1287 = vmatpush1.bf16.msra.mxu1 %v3374_v11  ;;  %v3401_v29 = vld [vmem:[#allocation5 + $0xec] ss:$16 sps:$4 sm:$0xff]   ;;  %v3403_v30 = vld [vmem:[#allocation5 + $0xe0] ss:$16 sps:$4 sm:$0xff]   ;;  %v3404_v31 = vld [vmem:[#allocation5 + $0xe8] ss:$16 sps:$4 sm:$0xff]  }
  0xdc   : > { %1202 = vmatprep.subr.bf16.mxu0 %v3375_v12  ;;  %1288 = vmatprep.subr.bf16.mxu1 %v3377_v13  ;;  %v3405_v32 = vld [vmem:[#allocation5 + $0x104] ss:$16 sps:$4 sm:$0xff]   ;;  %v3407_v33 = vld [vmem:[#allocation5 + $0x10c] ss:$16 sps:$4 sm:$0xff]   ;;  %v3409_v34 = vld [vmem:[#allocation5 + $0x100] ss:$16 sps:$4 sm:$0xff]  }
  0xdd   : > { %v3410_v35 = vld [vmem:[#allocation5 + $0x108] ss:$16 sps:$4 sm:$0xff]   ;;  %v3411_v36 = vld [vmem:[#allocation5 + $0x124] ss:$16 sps:$4 sm:$0xff]   ;;  %v3413_v37 = vld [vmem:[#allocation5 + $0x12c] ss:$16 sps:$4 sm:$0xff]  }
  0xde   : > { %v3415_v38 = vld [vmem:[#allocation5 + $0x120] ss:$16 sps:$4 sm:$0xff]   ;;  %v3416_v39 = vld [vmem:[#allocation5 + $0x128] ss:$16 sps:$4 sm:$0xff]   ;;  %v3417_v40 = vld [vmem:[#allocation5 + $0x144] ss:$16 sps:$4 sm:$0xff]  }
  0xdf   : > { %1203 = vmatpush1.bf16.msra.mxu0 %v3379_v14  ;;  %1289 = vmatpush1.bf16.msra.mxu1 %v3380_v15  ;;  %v3419_v41 = vld [vmem:[#allocation5 + $0x14c] ss:$16 sps:$4 sm:$0xff]   ;;  %v3421_v42 = vld [vmem:[#allocation5 + $0x140] ss:$16 sps:$4 sm:$0xff]   ;;  %v3422_v43 = vld [vmem:[#allocation5 + $0x148] ss:$16 sps:$4 sm:$0xff]  }
  0xe0   : > { %1204 = vmatprep.subr.bf16.mxu0 %v3381_v16  ;;  %1290 = vmatprep.subr.bf16.mxu1 %v3383_v17  ;;  %v3423_v44 = vld [vmem:[#allocation5 + $0x164] ss:$16 sps:$4 sm:$0xff]   ;;  %v3425_v45 = vld [vmem:[#allocation5 + $0x16c] ss:$16 sps:$4 sm:$0xff]   ;;  %v3427_v46 = vld [vmem:[#allocation5 + $0x160] ss:$16 sps:$4 sm:$0xff]  }
  0xe1   : > { %v3428_v47 = vld [vmem:[#allocation5 + $0x168] ss:$16 sps:$4 sm:$0xff]   ;;  %v3455_v48 = vld [vmem:[%s4379_s13 + $0x4] ss:$16 sps:$4 sm:$0xff]   ;;  %v3431_v50 = vld [vmem:[#allocation5 + $0x18c] ss:$16 sps:$4 sm:$0xff]  }
  0xe2   : > { %v3429_v49 = vld [vmem:[#allocation5 + $0x184] ss:$16 sps:$4 sm:$0xff]   ;;  %1228 = vmatprep.mubr.bf16.mxu0 %v3455_v48  ;;  %1314 = vmatprep.mubr.bf16.mxu1 %v3455_v48  ;;  %v3433_v51 = vld [vmem:[#allocation5 + $0x180] ss:$16 sps:$4 sm:$0xff]   ;;  %v3434_v52 = vld [vmem:[#allocation5 + $0x188] ss:$16 sps:$4 sm:$0xff]  }
  0xe3   : > { %1205 = vmatpush1.bf16.msra.mxu0 %v3385_v18  ;;  %1291 = vmatpush1.bf16.msra.mxu1 %v3386_v19  ;;  %v3435_v53 = vld [vmem:[#allocation5 + $0x1a4] ss:$16 sps:$4 sm:$0xff]   ;;  %v3437_v54 = vld [vmem:[#allocation5 + $0x1ac] ss:$16 sps:$4 sm:$0xff]   ;;  %v3439_v55 = vld [vmem:[#allocation5 + $0x1a0] ss:$16 sps:$4 sm:$0xff]  }
  0xe4   : > { %1206 = vmatprep.subr.bf16.mxu0 %v3387_v20  ;;  %1292 = vmatprep.subr.bf16.mxu1 %v3389_v21  ;;  %v3440_v56 = vld [vmem:[#allocation5 + $0x1a8] ss:$16 sps:$4 sm:$0xff]   ;;  %v3441_v57 = vld [vmem:[#allocation5 + $0x1c4] ss:$16 sps:$4 sm:$0xff]   ;;  %v3443_v58 = vld [vmem:[#allocation5 + $0x1cc] ss:$16 sps:$4 sm:$0xff]  }
  0xe5   : > { %v3445_v59 = vld [vmem:[#allocation5 + $0x1c0] ss:$16 sps:$4 sm:$0xff]   ;;  %v3446_v60 = vld [vmem:[#allocation5 + $0x1c8] ss:$16 sps:$4 sm:$0xff]   ;;  %v3447_v61 = vld [vmem:[#allocation5 + $0x1e4] ss:$16 sps:$4 sm:$0xff]  }
  0xe6   : > { %v3449_v62 = vld [vmem:[#allocation5 + $0x1ec] ss:$16 sps:$4 sm:$0xff]   ;;  %v3451_v63 = vld [vmem:[#allocation5 + $0x1e0] ss:$16 sps:$4 sm:$0xff]   ;;  %v3452_v0 = vld [vmem:[#allocation5 + $0x1e8] ss:$16 sps:$4 sm:$0xff]  }
  0xe7   : > { %1207 = vmatpush1.bf16.msra.mxu0 %v3391_v22  ;;  %1293 = vmatpush1.bf16.msra.mxu1 %v3392_v23  ;;  %v3458_v1 = vld [vmem:[#allocation5 + $0x204] ss:$16 sps:$4 sm:$0xff]   ;;  %v3461_v2 = vld [vmem:[#allocation5 + $0x20c] ss:$16 sps:$4 sm:$0xff]   ;;  %v3453_v3 = vld [vmem:[%s4379_s13] ss:$16 sps:$4 sm:$0xff]  }
  0xe8   : > { %1208 = vmatprep.subr.bf16.mxu0 %v3393_v24  ;;  %1294 = vmatprep.subr.bf16.mxu1 %v3395_v25  ;;  %v3456_v4 = vld [vmem:[#allocation5 + $0x200] ss:$16 sps:$4 sm:$0xff]   ;;  %v3459_v5 = vld [vmem:[#allocation5 + $0x208] ss:$16 sps:$4 sm:$0xff]   ;;  %v3464_v6 = vld [vmem:[#allocation5 + $0x224] ss:$16 sps:$4 sm:$0xff]  }
  0xe9   : > { %v3467_v7 = vld [vmem:[#allocation5 + $0x22c] ss:$16 sps:$4 sm:$0xff]   ;;  %v3462_v8 = vld [vmem:[#allocation5 + $0x220] ss:$16 sps:$4 sm:$0xff]   ;;  %v3465_v9 = vld [vmem:[#allocation5 + $0x228] ss:$16 sps:$4 sm:$0xff]  }
  0xea   : > { %v3470_v10 = vld [vmem:[#allocation5 + $0x244] ss:$16 sps:$4 sm:$0xff]   ;;  %v3473_v11 = vld [vmem:[#allocation5 + $0x24c] ss:$16 sps:$4 sm:$0xff]   ;;  %v3468_v12 = vld [vmem:[#allocation5 + $0x240] ss:$16 sps:$4 sm:$0xff]  }
  0xeb   : > { %1209 = vmatpush1.bf16.msra.mxu0 %v3397_v26  ;;  %1295 = vmatpush1.bf16.msra.mxu1 %v3398_v27  ;;  %v3471_v13 = vld [vmem:[#allocation5 + $0x248] ss:$16 sps:$4 sm:$0xff]   ;;  %v3476_v14 = vld [vmem:[#allocation5 + $0x264] ss:$16 sps:$4 sm:$0xff]   ;;  %v3479_v15 = vld [vmem:[#allocation5 + $0x26c] ss:$16 sps:$4 sm:$0xff]  }
  0xec   : > { %1210 = vmatprep.subr.bf16.mxu0 %v3399_v28  ;;  %1296 = vmatprep.subr.bf16.mxu1 %v3401_v29  ;;  %v3474_v16 = vld [vmem:[#allocation5 + $0x260] ss:$16 sps:$4 sm:$0xff]   ;;  %v3477_v17 = vld [vmem:[#allocation5 + $0x268] ss:$16 sps:$4 sm:$0xff]   ;;  %v3482_v18 = vld [vmem:[#allocation5 + $0x284] ss:$16 sps:$4 sm:$0xff]  }
  0xed   : > { %v3485_v19 = vld [vmem:[#allocation5 + $0x28c] ss:$16 sps:$4 sm:$0xff]   ;;  %v3480_v20 = vld [vmem:[#allocation5 + $0x280] ss:$16 sps:$4 sm:$0xff]   ;;  %v3483_v21 = vld [vmem:[#allocation5 + $0x288] ss:$16 sps:$4 sm:$0xff]  }
  0xee   : > { %v3488_v22 = vld [vmem:[#allocation5 + $0x2a4] ss:$16 sps:$4 sm:$0xff]   ;;  %v3491_v23 = vld [vmem:[#allocation5 + $0x2ac] ss:$16 sps:$4 sm:$0xff]   ;;  %v3486_v24 = vld [vmem:[#allocation5 + $0x2a0] ss:$16 sps:$4 sm:$0xff]  }
  0xef   : > { %1211 = vmatpush1.bf16.msra.mxu0 %v3403_v30  ;;  %1297 = vmatpush1.bf16.msra.mxu1 %v3404_v31  ;;  %v3489_v25 = vld [vmem:[#allocation5 + $0x2a8] ss:$16 sps:$4 sm:$0xff]   ;;  %v3494_v26 = vld [vmem:[#allocation5 + $0x2c4] ss:$16 sps:$4 sm:$0xff]   ;;  %v3497_v27 = vld [vmem:[#allocation5 + $0x2cc] ss:$16 sps:$4 sm:$0xff]  }
  0xf0   : > { %1212 = vmatprep.subr.bf16.mxu0 %v3405_v32  ;;  %1298 = vmatprep.subr.bf16.mxu1 %v3407_v33  ;;  %v3492_v28 = vld [vmem:[#allocation5 + $0x2c0] ss:$16 sps:$4 sm:$0xff]   ;;  %v3495_v29 = vld [vmem:[#allocation5 + $0x2c8] ss:$16 sps:$4 sm:$0xff]   ;;  %v3554_v30 = vld [vmem:[%s4379_s13 + $0xc] ss:$16 sps:$4 sm:$0xff]  }
  0xf1   : > { %v3500_v31 = vld [vmem:[#allocation5 + $0x2e4] ss:$16 sps:$4 sm:$0xff]   ;;  %v3503_v32 = vld [vmem:[#allocation5 + $0x2ec] ss:$16 sps:$4 sm:$0xff]   ;;  %v3498_v33 = vld [vmem:[#allocation5 + $0x2e0] ss:$16 sps:$4 sm:$0xff]  }
  0xf2   : > { %v3527_v48 = vld [vmem:[#allocation5 + $0x36c] ss:$16 sps:$4 sm:$0xff]   ;;  %s2866_s8 = sshll.u32 %s4375_s20, 4  ;;  %s3167_s12 = sshll.u32 %s4132_s30, 8 }
  0xf3   : > { %1213 = vmatpush1.bf16.msra.mxu0 %v3409_v34  ;;  %1299 = vmatpush1.bf16.msra.mxu1 %v3410_v35  ;;  %v3501_v34 = vld [vmem:[#allocation5 + $0x2e8] ss:$16 sps:$4 sm:$0xff]   ;;  %v3506_v35 = vld [vmem:[#allocation5 + $0x304] ss:$16 sps:$4 sm:$0xff]   ;;  %s378_s10 = scalar_lea.vmem [#allocation14], %s2866_s8  ;;  %s4434_s22 = scalar_lea.hbm %s4485_s7, %s3167_s12 }
  0xf4   : > { %1214 = vmatprep.subr.bf16.mxu0 %v3411_v36  ;;  %1300 = vmatprep.subr.bf16.mxu1 %v3413_v37  ;;  %v3509_v36 = vld [vmem:[#allocation5 + $0x30c] ss:$16 sps:$4 sm:$0xff]   ;;  %v3504_v37 = vld [vmem:[#allocation5 + $0x300] ss:$16 sps:$4 sm:$0xff]   ;;  %s2715_s16 = sshll.u32 %s378_s10, 4  ;;  %s2702_s9 = scalar_lea.sflag [#allocation4], %s4375_s20  ;;  %s4429_s16 = int_to_ptr.vmem [resolvable:$true] %s2715_s16 }
  0xf5   : > { %s3977_s14 = scalar_lea.vmem %s4429_s16, 256  ;;  %p4511_p9 = scmp.ne.s32.totalorder %s4499_s23, 0 }
  0xf6   : > { %p3978_p6 = scmp.ne.s32.totalorder %s4429_s16, %s3977_s14  ;;  %s4068_s30 = smov [#allocation14]  }
  0xf7   : > { %1215 = vmatpush1.bf16.msra.mxu0 %v3415_v38  ;;  %1301 = vmatpush1.bf16.msra.mxu1 %v3416_v39  ;;  %v3507_v38 = vld [vmem:[#allocation5 + $0x308] ss:$16 sps:$4 sm:$0xff]   ;;  %v3512_v39 = vld [vmem:[#allocation5 + $0x324] ss:$16 sps:$4 sm:$0xff]   ;;  %s3981_s17 = sshll.u32 %s4068_s30, 4  ;;  %s3982_s17 = int_to_ptr.vmem [resolvable:$false] %s3981_s17 }
  0xf8   : > { %1216 = vmatprep.subr.bf16.mxu0 %v3417_v40  ;;  %1302 = vmatprep.subr.bf16.mxu1 %v3419_v41  ;;  %v3515_v40 = vld [vmem:[#allocation5 + $0x32c] ss:$16 sps:$4 sm:$0xff]   ;;  %v3510_v41 = vld [vmem:[#allocation5 + $0x320] ss:$16 sps:$4 sm:$0xff]   ;;  %p3979_p12 = pnand %p3978_p6, %p4511_p9  ;;  %s3983_s1 = scalar_lea.vmem %s3982_s17, 512 }
  0xf9   : > { %p3984_p1 = scmp.lt.s32.totalorder %s4429_s16, %s3982_s17  ;;  %p3985_p3 = scmp.lt.s32.totalorder %s3983_s1, %s3977_s14 }
  0xfa   : > { %p3980_p13 = pneg %p3979_p12 }
  0xfb   : > { %1217 = vmatpush1.bf16.msra.mxu0 %v3421_v42  ;;  %1303 = vmatpush1.bf16.msra.mxu1 %v3422_v43  ;;  %v3513_v42 = vld [vmem:[#allocation5 + $0x328] ss:$16 sps:$4 sm:$0xff]   ;;  %v3518_v43 = vld [vmem:[#allocation5 + $0x344] ss:$16 sps:$4 sm:$0xff]   ;;  %p3986_p2 = por %p3985_p3, %p3984_p1 }
  0xfc   : > { %1218 = vmatprep.subr.bf16.mxu0 %v3423_v44  ;;  %1304 = vmatprep.subr.bf16.mxu1 %v3425_v45  ;;  %v3521_v44 = vld [vmem:[#allocation5 + $0x34c] ss:$16 sps:$4 sm:$0xff]   ;;  %v3516_v45 = vld [vmem:[#allocation5 + $0x340] ss:$16 sps:$4 sm:$0xff]  }
  0xfd   : > { %p3987_p8 = pnand %p3986_p2, %p3980_p13 }
  0xff   : > { %1219 = vmatpush1.bf16.msra.mxu0 %v3427_v46  ;;  %1305 = vmatpush1.bf16.msra.mxu1 %v3428_v47  ;;  %v3519_v46 = vld [vmem:[#allocation5 + $0x348] ss:$16 sps:$4 sm:$0xff]   ;;  %v3524_v47 = vld [vmem:[#allocation5 + $0x364] ss:$16 sps:$4 sm:$0xff]  }
 0x100   : > { %1220 = vmatprep.subr.bf16.mxu0 %v3429_v49  ;;  %1306 = vmatprep.subr.bf16.mxu1 %v3431_v50  ;;  %v3522_v49 = vld [vmem:[#allocation5 + $0x360] ss:$16 sps:$4 sm:$0xff]   ;;  %v3525_v50 = vld [vmem:[#allocation5 + $0x368] ss:$16 sps:$4 sm:$0xff]  }
 0x103   : > { %1221 = vmatpush1.bf16.msra.mxu0 %v3433_v51  ;;  %1307 = vmatpush1.bf16.msra.mxu1 %v3434_v52  ;;  %v3530_v51 = vld [vmem:[#allocation5 + $0x384] ss:$16 sps:$4 sm:$0xff]   ;;  %v3533_v52 = vld [vmem:[#allocation5 + $0x38c] ss:$16 sps:$4 sm:$0xff]  }
 0x104   : > { %1222 = vmatprep.subr.bf16.mxu0 %v3435_v53  ;;  %1308 = vmatprep.subr.bf16.mxu1 %v3437_v54  ;;  %v3528_v53 = vld [vmem:[#allocation5 + $0x380] ss:$16 sps:$4 sm:$0xff]   ;;  %v3531_v54 = vld [vmem:[#allocation5 + $0x388] ss:$16 sps:$4 sm:$0xff]  }
 0x107   : > { %1223 = vmatpush1.bf16.msra.mxu0 %v3439_v55  ;;  %1309 = vmatpush1.bf16.msra.mxu1 %v3440_v56  ;;  %v3536_v55 = vld [vmem:[#allocation5 + $0x3a4] ss:$16 sps:$4 sm:$0xff]   ;;  %v3539_v56 = vld [vmem:[#allocation5 + $0x3ac] ss:$16 sps:$4 sm:$0xff]  }
 0x108   : > { %1224 = vmatprep.subr.bf16.mxu0 %v3441_v57  ;;  %1310 = vmatprep.subr.bf16.mxu1 %v3443_v58  ;;  %v3534_v57 = vld [vmem:[#allocation5 + $0x3a0] ss:$16 sps:$4 sm:$0xff]   ;;  %v3537_v58 = vld [vmem:[#allocation5 + $0x3a8] ss:$16 sps:$4 sm:$0xff]  }
 0x10b   : > { %1225 = vmatpush1.bf16.msra.mxu0 %v3445_v59  ;;  %1311 = vmatpush1.bf16.msra.mxu1 %v3446_v60  ;;  %v3542_v59 = vld [vmem:[#allocation5 + $0x3c4] ss:$16 sps:$4 sm:$0xff]   ;;  %v3545_v60 = vld [vmem:[#allocation5 + $0x3cc] ss:$16 sps:$4 sm:$0xff]  }
 0x10c   : > { %1226 = vmatprep.subr.bf16.mxu0 %v3447_v61  ;;  %1312 = vmatprep.subr.bf16.mxu1 %v3449_v62  ;;  %v3540_v61 = vld [vmem:[#allocation5 + $0x3c0] ss:$16 sps:$4 sm:$0xff]   ;;  %v3543_v62 = vld [vmem:[#allocation5 + $0x3c8] ss:$16 sps:$4 sm:$0xff]  }
 0x10f   : > { %1227 = vmatpush1.bf16.msra.mxu0 %v3451_v63  ;;  %1313 = vmatpush1.bf16.msra.mxu1 %v3452_v0  ;;  %v3548_v63 = vld [vmem:[#allocation5 + $0x3e4] ss:$16 sps:$4 sm:$0xff]   ;;  %v3551_v0 = vld [vmem:[#allocation5 + $0x3ec] ss:$16 sps:$4 sm:$0xff]  }
 0x110   : > { %1239 = vmatprep.subr.bf16.mxu0 %v3458_v1  ;;  %1325 = vmatprep.subr.bf16.mxu1 %v3461_v2  ;;  %v3546_v1 = vld [vmem:[#allocation5 + $0x3e0] ss:$16 sps:$4 sm:$0xff]   ;;  %v3549_v2 = vld [vmem:[#allocation5 + $0x3e8] ss:$16 sps:$4 sm:$0xff]  }
 0x112   : > { %1229 = vmatmul.mubr.bf16.vlgmr.msra.gmra.mrb[0].mxu0 %v3453_v3  ;;  %1315 = vmatmul.mubr.bf16.vlgmr.msra.gmra.mrb[0].mxu1 %v3453_v3  ;;  %v3552_v3 = vld [vmem:[%s4379_s13 + $0x8] ss:$16 sps:$4 sm:$0xff]  }
 0x113   : > { %1240 = vmatpush1.bf16.msra.mxu0 %v3456_v4  ;;  %1326 = vmatpush1.bf16.msra.mxu1 %v3459_v5  ;;  %v3557_v4 = vld [vmem:[#allocation8 + $0x4] ss:$16 sps:$4 sm:$0xff]   ;;  %v3560_v5 = vld [vmem:[#allocation8 + $0xc] ss:$16 sps:$4 sm:$0xff]  }
 0x114   : > { %1241 = vmatprep.subr.bf16.mxu0 %v3464_v6  ;;  %1327 = vmatprep.subr.bf16.mxu1 %v3467_v7  ;;  %v3555_v6 = vld [vmem:[#allocation8] ss:$16 sps:$4 sm:$0xff]   ;;  %v3558_v7 = vld [vmem:[#allocation8 + $0x8] ss:$16 sps:$4 sm:$0xff]  }
 0x115   : > { %1271 = vmatprep.mubr.bf16.mxu0 %v3554_v30  ;;  %1357 = vmatprep.mubr.bf16.mxu1 %v3554_v30  ;;  %v3591_v30 = vld [vmem:[#allocation8 + $0xc0] ss:$16 sps:$4 sm:$0xff]  }
 0x117   : > { %1242 = vmatpush1.bf16.msra.mxu0 %v3462_v8  ;;  %1328 = vmatpush1.bf16.msra.mxu1 %v3465_v9  ;;  %v3563_v8 = vld [vmem:[#allocation8 + $0x24] ss:$16 sps:$4 sm:$0xff]   ;;  %v3566_v9 = vld [vmem:[#allocation8 + $0x2c] ss:$16 sps:$4 sm:$0xff]  }
 0x118   : > { %1243 = vmatprep.subr.bf16.mxu0 %v3470_v10  ;;  %1329 = vmatprep.subr.bf16.mxu1 %v3473_v11  ;;  %v3561_v10 = vld [vmem:[#allocation8 + $0x20] ss:$16 sps:$4 sm:$0xff]   ;;  %v3564_v11 = vld [vmem:[#allocation8 + $0x28] ss:$16 sps:$4 sm:$0xff]  }
 0x11b   : > { %1244 = vmatpush1.bf16.msra.mxu0 %v3468_v12  ;;  %1330 = vmatpush1.bf16.msra.mxu1 %v3471_v13  ;;  %v3569_v12 = vld [vmem:[#allocation8 + $0x44] ss:$16 sps:$4 sm:$0xff]   ;;  %v3572_v13 = vld [vmem:[#allocation8 + $0x4c] ss:$16 sps:$4 sm:$0xff]  }
 0x11c   : > { %1245 = vmatprep.subr.bf16.mxu0 %v3476_v14  ;;  %1331 = vmatprep.subr.bf16.mxu1 %v3479_v15  ;;  %v3567_v14 = vld [vmem:[#allocation8 + $0x40] ss:$16 sps:$4 sm:$0xff]   ;;  %v3570_v15 = vld [vmem:[#allocation8 + $0x48] ss:$16 sps:$4 sm:$0xff]  }
 0x11f   : > { %1246 = vmatpush1.bf16.msra.mxu0 %v3474_v16  ;;  %1332 = vmatpush1.bf16.msra.mxu1 %v3477_v17  ;;  %v3575_v16 = vld [vmem:[#allocation8 + $0x64] ss:$16 sps:$4 sm:$0xff]   ;;  %v3578_v17 = vld [vmem:[#allocation8 + $0x6c] ss:$16 sps:$4 sm:$0xff]  }
 0x120   : > { %1247 = vmatprep.subr.bf16.mxu0 %v3482_v18  ;;  %1333 = vmatprep.subr.bf16.mxu1 %v3485_v19  ;;  %v3573_v18 = vld [vmem:[#allocation8 + $0x60] ss:$16 sps:$4 sm:$0xff]   ;;  %v3576_v19 = vld [vmem:[#allocation8 + $0x68] ss:$16 sps:$4 sm:$0xff]  }
 0x123   : > { %1248 = vmatpush1.bf16.msra.mxu0 %v3480_v20  ;;  %1334 = vmatpush1.bf16.msra.mxu1 %v3483_v21  ;;  %v3581_v20 = vld [vmem:[#allocation8 + $0x84] ss:$16 sps:$4 sm:$0xff]   ;;  %v3584_v21 = vld [vmem:[#allocation8 + $0x8c] ss:$16 sps:$4 sm:$0xff]  }
 0x124   : > { %1249 = vmatprep.subr.bf16.mxu0 %v3488_v22  ;;  %1335 = vmatprep.subr.bf16.mxu1 %v3491_v23  ;;  %v3579_v22 = vld [vmem:[#allocation8 + $0x80] ss:$16 sps:$4 sm:$0xff]   ;;  %v3582_v23 = vld [vmem:[#allocation8 + $0x88] ss:$16 sps:$4 sm:$0xff]  }
 0x127   : > { %1250 = vmatpush1.bf16.msra.mxu0 %v3486_v24  ;;  %1336 = vmatpush1.bf16.msra.mxu1 %v3489_v25  ;;  %v3587_v24 = vld [vmem:[#allocation8 + $0xa4] ss:$16 sps:$4 sm:$0xff]   ;;  %v3590_v25 = vld [vmem:[#allocation8 + $0xac] ss:$16 sps:$4 sm:$0xff]  }
 0x128   : > { %1251 = vmatprep.subr.bf16.mxu0 %v3494_v26  ;;  %1337 = vmatprep.subr.bf16.mxu1 %v3497_v27  ;;  %v3585_v26 = vld [vmem:[#allocation8 + $0xa0] ss:$16 sps:$4 sm:$0xff]   ;;  %v3588_v27 = vld [vmem:[#allocation8 + $0xa8] ss:$16 sps:$4 sm:$0xff]  }
 0x12b   : > { %1252 = vmatpush1.bf16.msra.mxu0 %v3492_v28  ;;  %1338 = vmatpush1.bf16.msra.mxu1 %v3495_v29  ;;  %v3593_v28 = vld [vmem:[#allocation8 + $0xc4] ss:$16 sps:$4 sm:$0xff]   ;;  %v3596_v29 = vld [vmem:[#allocation8 + $0xcc] ss:$16 sps:$4 sm:$0xff]  }
 0x12c   : > { %1253 = vmatprep.subr.bf16.mxu0 %v3500_v31  ;;  %1339 = vmatprep.subr.bf16.mxu1 %v3503_v32  ;;  %v3594_v31 = vld [vmem:[#allocation8 + $0xc8] ss:$16 sps:$4 sm:$0xff]   ;;  %v3599_v32 = vld [vmem:[#allocation8 + $0xe4] ss:$16 sps:$4 sm:$0xff]  }
 0x12f   : > { %1254 = vmatpush1.bf16.msra.mxu0 %v3498_v33  ;;  %1340 = vmatpush1.bf16.msra.mxu1 %v3501_v34  ;;  %v3602_v33 = vld [vmem:[#allocation8 + $0xec] ss:$16 sps:$4 sm:$0xff]   ;;  %v3597_v34 = vld [vmem:[#allocation8 + $0xe0] ss:$16 sps:$4 sm:$0xff]  }
 0x130   : > { %1255 = vmatprep.subr.bf16.mxu0 %v3506_v35  ;;  %1341 = vmatprep.subr.bf16.mxu1 %v3509_v36  ;;  %v3600_v35 = vld [vmem:[#allocation8 + $0xe8] ss:$16 sps:$4 sm:$0xff]   ;;  %v3605_v36 = vld [vmem:[#allocation8 + $0x104] ss:$16 sps:$4 sm:$0xff]  }
 0x133   : > { %1256 = vmatpush1.bf16.msra.mxu0 %v3504_v37  ;;  %1342 = vmatpush1.bf16.msra.mxu1 %v3507_v38  ;;  %v3608_v37 = vld [vmem:[#allocation8 + $0x10c] ss:$16 sps:$4 sm:$0xff]   ;;  %v3603_v38 = vld [vmem:[#allocation8 + $0x100] ss:$16 sps:$4 sm:$0xff]  }
 0x134   : > { %1257 = vmatprep.subr.bf16.mxu0 %v3512_v39  ;;  %1343 = vmatprep.subr.bf16.mxu1 %v3515_v40  ;;  %v3606_v39 = vld [vmem:[#allocation8 + $0x108] ss:$16 sps:$4 sm:$0xff]   ;;  %v3611_v40 = vld [vmem:[#allocation8 + $0x124] ss:$16 sps:$4 sm:$0xff]  }
 0x137   : > { %1258 = vmatpush1.bf16.msra.mxu0 %v3510_v41  ;;  %1344 = vmatpush1.bf16.msra.mxu1 %v3513_v42  ;;  %v3614_v41 = vld [vmem:[#allocation8 + $0x12c] ss:$16 sps:$4 sm:$0xff]   ;;  %v3609_v42 = vld [vmem:[#allocation8 + $0x120] ss:$16 sps:$4 sm:$0xff]  }
 0x138   : > { %1259 = vmatprep.subr.bf16.mxu0 %v3518_v43  ;;  %1345 = vmatprep.subr.bf16.mxu1 %v3521_v44  ;;  %v3612_v43 = vld [vmem:[#allocation8 + $0x128] ss:$16 sps:$4 sm:$0xff]   ;;  %v3617_v44 = vld [vmem:[#allocation8 + $0x144] ss:$16 sps:$4 sm:$0xff]  }
 0x13b   : > { %1260 = vmatpush1.bf16.msra.mxu0 %v3516_v45  ;;  %1346 = vmatpush1.bf16.msra.mxu1 %v3519_v46  ;;  %v3620_v45 = vld [vmem:[#allocation8 + $0x14c] ss:$16 sps:$4 sm:$0xff]   ;;  %v3615_v46 = vld [vmem:[#allocation8 + $0x140] ss:$16 sps:$4 sm:$0xff]  }
 0x13c   : > { %1261 = vmatprep.subr.bf16.mxu0 %v3524_v47  ;;  %1347 = vmatprep.subr.bf16.mxu1 %v3527_v48  ;;  %v3618_v47 = vld [vmem:[#allocation8 + $0x148] ss:$16 sps:$4 sm:$0xff]   ;;  %v3623_v48 = vld [vmem:[#allocation8 + $0x164] ss:$16 sps:$4 sm:$0xff]  }
 0x13f   : > { %1262 = vmatpush1.bf16.msra.mxu0 %v3522_v49  ;;  %1348 = vmatpush1.bf16.msra.mxu1 %v3525_v50  ;;  %v3626_v49 = vld [vmem:[#allocation8 + $0x16c] ss:$16 sps:$4 sm:$0xff]   ;;  %v3621_v50 = vld [vmem:[#allocation8 + $0x160] ss:$16 sps:$4 sm:$0xff]  }
 0x140   : > { %1263 = vmatprep.subr.bf16.mxu0 %v3530_v51  ;;  %1349 = vmatprep.subr.bf16.mxu1 %v3533_v52  ;;  %v3624_v51 = vld [vmem:[#allocation8 + $0x168] ss:$16 sps:$4 sm:$0xff]   ;;  %v3629_v52 = vld [vmem:[#allocation8 + $0x184] ss:$16 sps:$4 sm:$0xff]  }
 0x143   : > { %1264 = vmatpush1.bf16.msra.mxu0 %v3528_v53  ;;  %1350 = vmatpush1.bf16.msra.mxu1 %v3531_v54  ;;  %v3632_v53 = vld [vmem:[#allocation8 + $0x18c] ss:$16 sps:$4 sm:$0xff]   ;;  %v3627_v54 = vld [vmem:[#allocation8 + $0x180] ss:$16 sps:$4 sm:$0xff]  }
 0x144   : > { %1265 = vmatprep.subr.bf16.mxu0 %v3536_v55  ;;  %1351 = vmatprep.subr.bf16.mxu1 %v3539_v56  ;;  %v3630_v55 = vld [vmem:[#allocation8 + $0x188] ss:$16 sps:$4 sm:$0xff]   ;;  %v3635_v56 = vld [vmem:[#allocation8 + $0x1a4] ss:$16 sps:$4 sm:$0xff]  }
 0x147   : > { %1266 = vmatpush1.bf16.msra.mxu0 %v3534_v57  ;;  %1352 = vmatpush1.bf16.msra.mxu1 %v3537_v58  ;;  %v3638_v57 = vld [vmem:[#allocation8 + $0x1ac] ss:$16 sps:$4 sm:$0xff]   ;;  %v3633_v58 = vld [vmem:[#allocation8 + $0x1a0] ss:$16 sps:$4 sm:$0xff]  }
 0x148   : > { %1267 = vmatprep.subr.bf16.mxu0 %v3542_v59  ;;  %1353 = vmatprep.subr.bf16.mxu1 %v3545_v60  ;;  %v3636_v59 = vld [vmem:[#allocation8 + $0x1a8] ss:$16 sps:$4 sm:$0xff]   ;;  %v3641_v60 = vld [vmem:[#allocation8 + $0x1c4] ss:$16 sps:$4 sm:$0xff]  }
 0x14b   : > { %1268 = vmatpush1.bf16.msra.mxu0 %v3540_v61  ;;  %1354 = vmatpush1.bf16.msra.mxu1 %v3543_v62  ;;  %v3644_v61 = vld [vmem:[#allocation8 + $0x1cc] ss:$16 sps:$4 sm:$0xff]   ;;  %v3639_v62 = vld [vmem:[#allocation8 + $0x1c0] ss:$16 sps:$4 sm:$0xff]  }
 0x14c   : > { %1269 = vmatprep.subr.bf16.mxu0 %v3548_v63  ;;  %1355 = vmatprep.subr.bf16.mxu1 %v3551_v0  ;;  %v3642_v63 = vld [vmem:[#allocation8 + $0x1c8] ss:$16 sps:$4 sm:$0xff]   ;;  %v3647_v0 = vld [vmem:[#allocation8 + $0x1e4] ss:$16 sps:$4 sm:$0xff]  }
 0x14f   : > { %1270 = vmatpush1.bf16.msra.mxu0 %v3546_v1  ;;  %1356 = vmatpush1.bf16.msra.mxu1 %v3549_v2  ;;  %v3650_v1 = vld [vmem:[#allocation8 + $0x1ec] ss:$16 sps:$4 sm:$0xff]   ;;  %v3645_v2 = vld [vmem:[#allocation8 + $0x1e0] ss:$16 sps:$4 sm:$0xff]  }
 0x150   : > { %2170 = vmatprep.subr.bf16.mxu0 %v3557_v4  ;;  %2256 = vmatprep.subr.bf16.mxu1 %v3560_v5  ;;  %v3653_v4 = vld [vmem:[#allocation8 + $0x204] ss:$16 sps:$4 sm:$0xff]   ;;  %v3656_v5 = vld [vmem:[#allocation8 + $0x20c] ss:$16 sps:$4 sm:$0xff]  }
 0x152   : > { %1272 = vmatmul.mubr.bf16.vlgmr.msra.gmra.mrb[0].mxu0 %v3552_v3  ;;  %1358 = vmatmul.mubr.bf16.vlgmr.msra.gmra.mrb[0].mxu1 %v3552_v3  ;;  %v3648_v3 = vld [vmem:[#allocation8 + $0x1e8] ss:$16 sps:$4 sm:$0xff]  }
 0x153   : > { %2171 = vmatpush1.bf16.msra.mxu0 %v3555_v6  ;;  %2257 = vmatpush1.bf16.msra.mxu1 %v3558_v7  ;;  %v516_v6 = vlaneseq }
 0x154   : > { %2172 = vmatprep.subr.bf16.mxu0 %v3563_v8  ;;  %2258 = vmatprep.subr.bf16.mxu1 %v3566_v9 }
 0x155   : > { %v4401_v7 = vshrl.u32 %v516_v6, 7  ;;  %v3690_v6 = vld [vmem:[#allocation8 + $0x2c8] ss:$16 sps:$4 sm:$0xff]  }
 0x157   : > { %2173 = vmatpush1.bf16.msra.mxu0 %v3561_v10  ;;  %2259 = vmatpush1.bf16.msra.mxu1 %v3564_v11  ;;  %v518_v8 = vsub.s32 0, %v4401_v7  ;;  %v526_v9 = vsub.s32 2, %v4401_v7  ;;  %v514_v10 = vld [vmem:[#allocation7] sm:$0xf]  ;;  %v522_v11 = vsub.s32 1, %v4401_v7 }
 0x158   : > { %2174 = vmatprep.subr.bf16.mxu0 %v3569_v12  ;;  %2260 = vmatprep.subr.bf16.mxu1 %v3572_v13  ;;  %v530_v12 = vsub.s32 3, %v4401_v7 }
 0x159   : > { %v519_v13 = vrot.slane %v514_v10, %v518_v8 }
 0x15b   : > { %2175 = vmatpush1.bf16.msra.mxu0 %v3567_v14  ;;  %2261 = vmatpush1.bf16.msra.mxu1 %v3570_v15  ;;  %v527_v14 = vrot.slane %v514_v10, %v526_v9  ;;  %v523_v15 = vrot.slane %v514_v10, %v522_v11 }
 0x15c   : > { %2176 = vmatprep.subr.bf16.mxu0 %v3575_v16  ;;  %2262 = vmatprep.subr.bf16.mxu1 %v3578_v17  ;;  %v531_v16 = vrot.slane %v514_v10, %v530_v12  ;;  %v3695_v10 = vld [vmem:[#allocation8 + $0x2e4] ss:$16 sps:$4 sm:$0xff]  }
 0x15f   : > { %2177 = vmatpush1.bf16.msra.mxu0 %v3573_v18  ;;  %2263 = vmatpush1.bf16.msra.mxu1 %v3576_v19 }
 0x160   : > { %2178 = vmatprep.subr.bf16.mxu0 %v3581_v20  ;;  %2264 = vmatprep.subr.bf16.mxu1 %v3584_v21 }
 0x163   : > { %2179 = vmatpush1.bf16.msra.mxu0 %v3579_v22  ;;  %2265 = vmatpush1.bf16.msra.mxu1 %v3582_v23 }
 0x164   : > { %2180 = vmatprep.subr.bf16.mxu0 %v3587_v24  ;;  %2266 = vmatprep.subr.bf16.mxu1 %v3590_v25 }
 0x167   : > { %2181 = vmatpush1.bf16.msra.mxu0 %v3585_v26  ;;  %2267 = vmatpush1.bf16.msra.mxu1 %v3588_v27 }
 0x168   : > { %2182 = vmatprep.subr.bf16.mxu0 %v3593_v28  ;;  %2268 = vmatprep.subr.bf16.mxu1 %v3596_v29 }
 0x16b   : > { %2183 = vmatpush1.bf16.msra.mxu0 %v3591_v30  ;;  %2269 = vmatpush1.bf16.msra.mxu1 %v3594_v31 }
 0x16c   : > { %2184 = vmatprep.subr.bf16.mxu0 %v3599_v32  ;;  %2270 = vmatprep.subr.bf16.mxu1 %v3602_v33 }
 0x16f   : > { %2185 = vmatpush1.bf16.msra.mxu0 %v3597_v34  ;;  %2271 = vmatpush1.bf16.msra.mxu1 %v3600_v35 }
 0x170   : > { %2186 = vmatprep.subr.bf16.mxu0 %v3605_v36  ;;  %2272 = vmatprep.subr.bf16.mxu1 %v3608_v37 }
 0x173   : > { %2187 = vmatpush1.bf16.msra.mxu0 %v3603_v38  ;;  %2273 = vmatpush1.bf16.msra.mxu1 %v3606_v39 }
 0x174   : > { %2188 = vmatprep.subr.bf16.mxu0 %v3611_v40  ;;  %2274 = vmatprep.subr.bf16.mxu1 %v3614_v41 }
 0x177   : > { %2189 = vmatpush1.bf16.msra.mxu0 %v3609_v42  ;;  %2275 = vmatpush1.bf16.msra.mxu1 %v3612_v43 }
 0x178   : > { %2190 = vmatprep.subr.bf16.mxu0 %v3617_v44  ;;  %2276 = vmatprep.subr.bf16.mxu1 %v3620_v45  ;;  %v3651_v45 = vld [vmem:[#allocation8 + $0x200] ss:$16 sps:$4 sm:$0xff]  }
 0x17b   : > { %2191 = vmatpush1.bf16.msra.mxu0 %v3615_v46  ;;  %2277 = vmatpush1.bf16.msra.mxu1 %v3618_v47  ;;  %v3654_v46 = vld [vmem:[#allocation8 + $0x208] ss:$16 sps:$4 sm:$0xff]   ;;  %v3659_v47 = vld [vmem:[#allocation8 + $0x224] ss:$16 sps:$4 sm:$0xff]  }
 0x17c   : > { %2192 = vmatprep.subr.bf16.mxu0 %v3623_v48  ;;  %2278 = vmatprep.subr.bf16.mxu1 %v3626_v49  ;;  %v3662_v48 = vld [vmem:[#allocation8 + $0x22c] ss:$16 sps:$4 sm:$0xff]   ;;  %v3657_v49 = vld [vmem:[#allocation8 + $0x220] ss:$16 sps:$4 sm:$0xff]  }
 0x17f   : > { %2193 = vmatpush1.bf16.msra.mxu0 %v3621_v50  ;;  %2279 = vmatpush1.bf16.msra.mxu1 %v3624_v51  ;;  %v3660_v50 = vld [vmem:[#allocation8 + $0x228] ss:$16 sps:$4 sm:$0xff]   ;;  %v3665_v51 = vld [vmem:[#allocation8 + $0x244] ss:$16 sps:$4 sm:$0xff]  }
 0x180   : > { %2194 = vmatprep.subr.bf16.mxu0 %v3629_v52  ;;  %2280 = vmatprep.subr.bf16.mxu1 %v3632_v53  ;;  %v3668_v52 = vld [vmem:[#allocation8 + $0x24c] ss:$16 sps:$4 sm:$0xff]   ;;  %v3663_v53 = vld [vmem:[#allocation8 + $0x240] ss:$16 sps:$4 sm:$0xff]  }
 0x183   : > { %2195 = vmatpush1.bf16.msra.mxu0 %v3627_v54  ;;  %2281 = vmatpush1.bf16.msra.mxu1 %v3630_v55  ;;  %v3666_v54 = vld [vmem:[#allocation8 + $0x248] ss:$16 sps:$4 sm:$0xff]   ;;  %v3671_v55 = vld [vmem:[#allocation8 + $0x264] ss:$16 sps:$4 sm:$0xff]  }
 0x184   : > { %2196 = vmatprep.subr.bf16.mxu0 %v3635_v56  ;;  %2282 = vmatprep.subr.bf16.mxu1 %v3638_v57  ;;  %v3674_v56 = vld [vmem:[#allocation8 + $0x26c] ss:$16 sps:$4 sm:$0xff]   ;;  %v3669_v57 = vld [vmem:[#allocation8 + $0x260] ss:$16 sps:$4 sm:$0xff]  }
 0x187   : > { %2197 = vmatpush1.bf16.msra.mxu0 %v3633_v58  ;;  %2283 = vmatpush1.bf16.msra.mxu1 %v3636_v59  ;;  %v3672_v58 = vld [vmem:[#allocation8 + $0x268] ss:$16 sps:$4 sm:$0xff]   ;;  %v3677_v59 = vld [vmem:[#allocation8 + $0x284] ss:$16 sps:$4 sm:$0xff]  }
 0x188   : > { %2198 = vmatprep.subr.bf16.mxu0 %v3641_v60  ;;  %2284 = vmatprep.subr.bf16.mxu1 %v3644_v61  ;;  %v3680_v60 = vld [vmem:[#allocation8 + $0x28c] ss:$16 sps:$4 sm:$0xff]   ;;  %v3675_v61 = vld [vmem:[#allocation8 + $0x280] ss:$16 sps:$4 sm:$0xff]  }
 0x18b   : > { %2199 = vmatpush1.bf16.msra.mxu0 %v3639_v62  ;;  %2285 = vmatpush1.bf16.msra.mxu1 %v3642_v63  ;;  %v3678_v62 = vld [vmem:[#allocation8 + $0x288] ss:$16 sps:$4 sm:$0xff]   ;;  %v3683_v63 = vld [vmem:[#allocation8 + $0x2a4] ss:$16 sps:$4 sm:$0xff]  }
 0x18c   : > { %2200 = vmatprep.subr.bf16.mxu0 %v3647_v0  ;;  %2286 = vmatprep.subr.bf16.mxu1 %v3650_v1  ;;  %v3686_v0 = vld [vmem:[#allocation8 + $0x2ac] ss:$16 sps:$4 sm:$0xff]   ;;  %v3681_v1 = vld [vmem:[#allocation8 + $0x2a0] ss:$16 sps:$4 sm:$0xff]  }
 0x18f   : > { %2201 = vmatpush1.bf16.msra.mxu0 %v3645_v2  ;;  %2287 = vmatpush1.bf16.msra.mxu1 %v3648_v3  ;;  %v3684_v2 = vld [vmem:[#allocation8 + $0x2a8] ss:$16 sps:$4 sm:$0xff]   ;;  %v3689_v3 = vld [vmem:[#allocation8 + $0x2c4] ss:$16 sps:$4 sm:$0xff]  }
 0x190   : > { %2213 = vmatprep.subr.bf16.mxu0 %v3653_v4  ;;  %2299 = vmatprep.subr.bf16.mxu1 %v3656_v5  ;;  %v3692_v4 = vld [vmem:[#allocation8 + $0x2cc] ss:$16 sps:$4 sm:$0xff]   ;;  %v3687_v5 = vld [vmem:[#allocation8 + $0x2c0] ss:$16 sps:$4 sm:$0xff]  }
 0x225   : > { %v1273_v17 = vpop.f32.mrb[0].mxu0  ;;  %v1359_v18 = vpop.f32.mrb[0].mxu1 }
 0x226   : > { %v3212_v19 = vadd.f32 %v1273_v17, %v519_v13  ;;  %v3216_v20 = vadd.f32 %v1359_v18, %v527_v14  ;;  %v1275_v21 = vpop.f32.mrb[1].mxu0  ;;  %v1361_v22 = vpop.f32.mrb[1].mxu1  ;;  %v3704_v17 = vld [vmem:[#allocation8 + $0x30c] ss:$16 sps:$4 sm:$0xff]   ;;  %v3699_v18 = vld [vmem:[#allocation8 + $0x300] ss:$16 sps:$4 sm:$0xff]  }
 0x227   : > { %v3213_v23 = vadd.f32 %v1275_v21, %v523_v15  ;;  %v3217_v24 = vadd.f32 %v1361_v22, %v531_v16  ;;  %v1277_v25 = vpop.f32.mrb[2].mxu0  ;;  %v1363_v26 = vpop.f32.mrb[2].mxu1  ;;  %v3710_v21 = vld [vmem:[#allocation8 + $0x32c] ss:$16 sps:$4 sm:$0xff]   ;;  %v3705_v22 = vld [vmem:[#allocation8 + $0x320] ss:$16 sps:$4 sm:$0xff]  }
 0x228   : > { %v3214_v27 = vadd.f32 %v1277_v25, %v519_v13  ;;  %v3218_v28 = vadd.f32 %v1363_v26, %v527_v14  ;;  %v1279_v29 = vpop.f32.mrb[3].mxu0  ;;  %v1365_v30 = vpop.f32.mrb[3].mxu1  ;;  %v1368_v33 = vmax.f32 %v3212_v19, 0.0  ;;  %v1370_v34 = vmax.f32 %v3216_v20, 0.0  ;;  %v3698_v13 = vld [vmem:[#allocation8 + $0x2ec] ss:$16 sps:$4 sm:$0xff]  }
 0x229   : > { %v3215_v31 = vadd.f32 %v1279_v29, %v523_v15  ;;  %v3219_v32 = vadd.f32 %v1365_v30, %v531_v16  ;;  %v1369_v37 = vmax.f32 %v3213_v23, 0.0  ;;  %v1371_v38 = vmax.f32 %v3217_v24, 0.0  ;;  %v3693_v14 = vld [vmem:[#allocation8 + $0x2e0] ss:$16 sps:$4 sm:$0xff]   ;;  %v3696_v15 = vld [vmem:[#allocation8 + $0x2e8] ss:$16 sps:$4 sm:$0xff]  }
 0x22a   : > { %v1372_v35 = vmax.f32 %v3214_v27, 0.0  ;;  %v1374_v36 = vmax.f32 %v3218_v28, 0.0  ;;  %v3701_v16 = vld [vmem:[#allocation8 + $0x304] ss:$16 sps:$4 sm:$0xff]   ;;  %v3702_v19 = vld [vmem:[#allocation8 + $0x308] ss:$16 sps:$4 sm:$0xff]  }
 0x22b   : > { %v1373_v39 = vmax.f32 %v3215_v31, 0.0  ;;  %v1375_v40 = vmax.f32 %v3219_v32, 0.0  ;;  %v3707_v20 = vld [vmem:[#allocation8 + $0x324] ss:$16 sps:$4 sm:$0xff]   ;;  %v3708_v23 = vld [vmem:[#allocation8 + $0x328] ss:$16 sps:$4 sm:$0xff]  }
 0x22c   : > { %v1376_v41 = vpack.c.bf16 %v1372_v35, %v1368_v33  ;;  %v4415_v42 = vpack.c.bf16 %v1374_v36, %v1370_v34  ;;  %v3713_v24 = vld [vmem:[#allocation8 + $0x344] ss:$16 sps:$4 sm:$0xff]   ;;  %v3716_v25 = vld [vmem:[#allocation8 + $0x34c] ss:$16 sps:$4 sm:$0xff]   ;;  %v3711_v26 = vld [vmem:[#allocation8 + $0x340] ss:$16 sps:$4 sm:$0xff]  }
 0x22d   : > { %v1377_v43 = vpack.c.bf16 %v1373_v39, %v1369_v37  ;;  %v1379_v44 = vpack.c.bf16 %v1375_v40, %v1371_v38  ;;  %v3714_v27 = vld [vmem:[#allocation8 + $0x348] ss:$16 sps:$4 sm:$0xff]   ;;  %v3719_v28 = vld [vmem:[#allocation8 + $0x364] ss:$16 sps:$4 sm:$0xff]   ;;  %v3722_v29 = vld [vmem:[#allocation8 + $0x36c] ss:$16 sps:$4 sm:$0xff]  }
 0x22e   : > { %v3717_v30 = vld [vmem:[#allocation8 + $0x360] ss:$16 sps:$4 sm:$0xff]   ;;  %v3720_v31 = vld [vmem:[#allocation8 + $0x368] ss:$16 sps:$4 sm:$0xff]   ;;  %v3725_v32 = vld [vmem:[#allocation8 + $0x384] ss:$16 sps:$4 sm:$0xff]  }
 0x22f   : > { %2202 = vmatprep.mubr.bf16.mxu0 %v1377_v43  ;;  %2288 = vmatprep.mubr.bf16.mxu1 %v1377_v43  ;;  %v3728_v33 = vld [vmem:[#allocation8 + $0x38c] ss:$16 sps:$4 sm:$0xff]   ;;  %v3723_v34 = vld [vmem:[#allocation8 + $0x380] ss:$16 sps:$4 sm:$0xff]   ;;  %v3726_v35 = vld [vmem:[#allocation8 + $0x388] ss:$16 sps:$4 sm:$0xff]  }
 0x230   : > { %2203 = vmatmul.mubr.bf16.vlgmr.msra.gmra.mrb[4].mxu0 %v1376_v41  ;;  %2289 = vmatmul.mubr.bf16.vlgmr.msra.gmra.mrb[4].mxu1 %v1376_v41  ;;  %v3731_v36 = vld [vmem:[#allocation8 + $0x3a4] ss:$16 sps:$4 sm:$0xff]   ;;  %v3734_v37 = vld [vmem:[#allocation8 + $0x3ac] ss:$16 sps:$4 sm:$0xff]   ;;  %v3729_v38 = vld [vmem:[#allocation8 + $0x3a0] ss:$16 sps:$4 sm:$0xff]  }
 0x231   : > { %2214 = vmatpush1.bf16.msra.mxu0 %v3651_v45  ;;  %2300 = vmatpush1.bf16.msra.mxu1 %v3654_v46  ;;  %v3732_v39 = vld [vmem:[#allocation8 + $0x3a8] ss:$16 sps:$4 sm:$0xff]   ;;  %v3737_v40 = vld [vmem:[#allocation8 + $0x3c4] ss:$16 sps:$4 sm:$0xff]   ;;  %v3740_v41 = vld [vmem:[#allocation8 + $0x3cc] ss:$16 sps:$4 sm:$0xff]  }
 0x232   : > { %2245 = vmatprep.mubr.bf16.mxu0 %v1379_v44  ;;  %2331 = vmatprep.mubr.bf16.mxu1 %v1379_v44  ;;  %v3735_v43 = vld [vmem:[#allocation8 + $0x3c0] ss:$16 sps:$4 sm:$0xff]   ;;  %v3738_v44 = vld [vmem:[#allocation8 + $0x3c8] ss:$16 sps:$4 sm:$0xff]   ;;  %v3743_v45 = vld [vmem:[#allocation8 + $0x3e4] ss:$16 sps:$4 sm:$0xff]  }
 0x233   : > { %2215 = vmatprep.subr.bf16.mxu0 %v3659_v47  ;;  %2301 = vmatprep.subr.bf16.mxu1 %v3662_v48  ;;  %v3746_v46 = vld [vmem:[#allocation8 + $0x3ec] ss:$16 sps:$4 sm:$0xff]   ;;  %v3741_v47 = vld [vmem:[#allocation8 + $0x3e0] ss:$16 sps:$4 sm:$0xff]   ;;  %v3744_v48 = vld [vmem:[#allocation8 + $0x3e8] ss:$16 sps:$4 sm:$0xff]  }
 0x235   : > { %2216 = vmatpush1.bf16.msra.mxu0 %v3657_v49  ;;  %2302 = vmatpush1.bf16.msra.mxu1 %v3660_v50  ;;  %v3747_v49 = vld [vmem:[#allocation11 + $0x40] sm:$0xff]  }
 0x236   : > { %2217 = vmatprep.subr.bf16.mxu0 %v3665_v51  ;;  %2303 = vmatprep.subr.bf16.mxu1 %v3668_v52  ;;  %v3748_v50 = vld [vmem:[#allocation11 + $0xc0] sm:$0xff]  }
 0x237   : > { %v3749_v51 = vld [vmem:[#allocation11] sm:$0xff]  }
 0x238   : > { %v3750_v52 = vld [vmem:[#allocation11 + $0x80] sm:$0xff]  }
 0x239   : > { %2218 = vmatpush1.bf16.msra.mxu0 %v3663_v53  ;;  %2304 = vmatpush1.bf16.msra.mxu1 %v3666_v54  ;;  %v3751_v53 = vld [vmem:[#allocation11 + $0x48] sm:$0xff]  }
 0x23a   : > { %2219 = vmatprep.subr.bf16.mxu0 %v3671_v55  ;;  %2305 = vmatprep.subr.bf16.mxu1 %v3674_v56  ;;  %v3752_v54 = vld [vmem:[#allocation11 + $0xc8] sm:$0xff]  }
 0x23b   : > { %v3753_v55 = vld [vmem:[#allocation11 + $0x8] sm:$0xff]  }
 0x23c   : > { %v3754_v56 = vld [vmem:[#allocation11 + $0x88] sm:$0xff]  }
 0x23d   : > { %2220 = vmatpush1.bf16.msra.mxu0 %v3669_v57  ;;  %2306 = vmatpush1.bf16.msra.mxu1 %v3672_v58  ;;  %v3755_v57 = vld [vmem:[#allocation11 + $0x50] sm:$0xff]  }
 0x23e   : > { %2221 = vmatprep.subr.bf16.mxu0 %v3677_v59  ;;  %2307 = vmatprep.subr.bf16.mxu1 %v3680_v60  ;;  %v3756_v58 = vld [vmem:[#allocation11 + $0xd0] sm:$0xff]  }
 0x23f   : > { %v3757_v59 = vld [vmem:[#allocation11 + $0x10] sm:$0xff]  }
 0x240   : > { %v3758_v60 = vld [vmem:[#allocation11 + $0x90] sm:$0xff]  }
 0x241   : > { %2222 = vmatpush1.bf16.msra.mxu0 %v3675_v61  ;;  %2308 = vmatpush1.bf16.msra.mxu1 %v3678_v62  ;;  %v3759_v61 = vld [vmem:[#allocation11 + $0x58] sm:$0xff]  }
 0x242   : > { %2223 = vmatprep.subr.bf16.mxu0 %v3683_v63  ;;  %2309 = vmatprep.subr.bf16.mxu1 %v3686_v0  ;;  %v3760_v62 = vld [vmem:[#allocation11 + $0xd8] sm:$0xff]   ;;  %v3763_v0 = vld [vmem:[#allocation11 + $0x60] sm:$0xff]  }
 0x243   : > { %v3761_v63 = vld [vmem:[#allocation11 + $0x18] sm:$0xff]  }
 0x245   : > { %2224 = vmatpush1.bf16.msra.mxu0 %v3681_v1  ;;  %2310 = vmatpush1.bf16.msra.mxu1 %v3684_v2  ;;  %v3764_v1 = vld [vmem:[#allocation11 + $0xe0] sm:$0xff]  }
 0x246   : > { %2225 = vmatprep.subr.bf16.mxu0 %v3689_v3  ;;  %2311 = vmatprep.subr.bf16.mxu1 %v3692_v4  ;;  %v3765_v2 = vld [vmem:[#allocation11 + $0x20] sm:$0xff]   ;;  %v3767_v4 = vld [vmem:[#allocation11 + $0x68] sm:$0xff]  }
 0x247   : > { %v3766_v3 = vld [vmem:[#allocation11 + $0xa0] sm:$0xff]  }
 0x249   : > { %2226 = vmatpush1.bf16.msra.mxu0 %v3687_v5  ;;  %2312 = vmatpush1.bf16.msra.mxu1 %v3690_v6  ;;  %v3768_v5 = vld [vmem:[#allocation11 + $0xe8] sm:$0xff]  }
 0x24a   : > { %2227 = vmatprep.subr.bf16.mxu0 %v3695_v10  ;;  %2313 = vmatprep.subr.bf16.mxu1 %v3698_v13  ;;  %v3769_v6 = vld [vmem:[#allocation11 + $0x28] sm:$0xff]   ;;  %v3771_v13 = vld [vmem:[#allocation11 + $0x70] sm:$0xff]  }
 0x24b   : > { %v3770_v10 = vld [vmem:[#allocation11 + $0xa8] sm:$0xff]  }
 0x24d   : > { %2228 = vmatpush1.bf16.msra.mxu0 %v3693_v14  ;;  %2314 = vmatpush1.bf16.msra.mxu1 %v3696_v15  ;;  %v3772_v14 = vld [vmem:[#allocation11 + $0xf0] sm:$0xff]  }
 0x24e   : > { %2229 = vmatprep.subr.bf16.mxu0 %v3701_v16  ;;  %2315 = vmatprep.subr.bf16.mxu1 %v3704_v17  ;;  %v3773_v15 = vld [vmem:[#allocation11 + $0x30] sm:$0xff]   ;;  %v3775_v17 = vld [vmem:[#allocation11 + $0x78] sm:$0xff]  }
 0x24f   : > { %v3774_v16 = vld [vmem:[#allocation11 + $0xb0] sm:$0xff]  }
 0x251   : > { %2230 = vmatpush1.bf16.msra.mxu0 %v3699_v18  ;;  %2316 = vmatpush1.bf16.msra.mxu1 %v3702_v19  ;;  %v3776_v18 = vld [vmem:[#allocation11 + $0xf8] sm:$0xff]  }
 0x252   : > { %2231 = vmatprep.subr.bf16.mxu0 %v3707_v20  ;;  %2317 = vmatprep.subr.bf16.mxu1 %v3710_v21  ;;  %v3777_v19 = vld [vmem:[#allocation11 + $0x38] sm:$0xff]  }
 0x253   : > { %v3778_v20 = vld [vmem:[#allocation11 + $0xb8] sm:$0xff]  }
 0x254   : > { %v1508_v21 = vld [vmem:[#allocation10] sm:$0xf] }
 0x255   : > { %2232 = vmatpush1.bf16.msra.mxu0 %v3705_v22  ;;  %2318 = vmatpush1.bf16.msra.mxu1 %v3708_v23  ;;  %v1513_v22 = vrot.slane %v1508_v21, %v518_v8  ;;  %v1521_v23 = vrot.slane %v1508_v21, %v526_v9 }
 0x256   : > { %2233 = vmatprep.subr.bf16.mxu0 %v3713_v24  ;;  %2319 = vmatprep.subr.bf16.mxu1 %v3716_v25  ;;  %v1517_v24 = vrot.slane %v1508_v21, %v522_v11  ;;  %v1525_v25 = vrot.slane %v1508_v21, %v530_v12 }
 0x259   : > { %2234 = vmatpush1.bf16.msra.mxu0 %v3711_v26  ;;  %2320 = vmatpush1.bf16.msra.mxu1 %v3714_v27 }
 0x25a   : > { %2235 = vmatprep.subr.bf16.mxu0 %v3719_v28  ;;  %2321 = vmatprep.subr.bf16.mxu1 %v3722_v29 }
 0x25d   : > { %2236 = vmatpush1.bf16.msra.mxu0 %v3717_v30  ;;  %2322 = vmatpush1.bf16.msra.mxu1 %v3720_v31 }
 0x25e   : > { %2237 = vmatprep.subr.bf16.mxu0 %v3725_v32  ;;  %2323 = vmatprep.subr.bf16.mxu1 %v3728_v33 }
 0x261   : > { %2238 = vmatpush1.bf16.msra.mxu0 %v3723_v34  ;;  %2324 = vmatpush1.bf16.msra.mxu1 %v3726_v35 }
 0x262   : > { %2239 = vmatprep.subr.bf16.mxu0 %v3731_v36  ;;  %2325 = vmatprep.subr.bf16.mxu1 %v3734_v37 }
 0x265   : > { %2240 = vmatpush1.bf16.msra.mxu0 %v3729_v38  ;;  %2326 = vmatpush1.bf16.msra.mxu1 %v3732_v39 }
 0x266   : > { %2241 = vmatprep.subr.bf16.mxu0 %v3737_v40  ;;  %2327 = vmatprep.subr.bf16.mxu1 %v3740_v41 }
 0x269   : > { %2242 = vmatpush1.bf16.msra.mxu0 %v3735_v43  ;;  %2328 = vmatpush1.bf16.msra.mxu1 %v3738_v44 }
 0x26a   : > { %2243 = vmatprep.subr.bf16.mxu0 %v3743_v45  ;;  %2329 = vmatprep.subr.bf16.mxu1 %v3746_v46 }
 0x26d   : > { %2244 = vmatpush1.bf16.msra.mxu0 %v3741_v47  ;;  %2330 = vmatpush1.bf16.msra.mxu1 %v3744_v48 }
 0x26e   : > { %3168 = vmatprep.subr.bf16.mxu0 %v3747_v49  ;;  %3190 = vmatprep.subr.bf16.mxu1 %v3748_v50 }
 0x270   : > { %2246 = vmatmul.mubr.bf16.vlgmr.msra.gmra.mrb[4].mxu0 %v4415_v42  ;;  %2332 = vmatmul.mubr.bf16.vlgmr.msra.gmra.mrb[4].mxu1 %v4415_v42  ;;  %v3762_v42 = vld [vmem:[#allocation11 + $0x98] sm:$0xff]  }
 0x271   : > { %3169 = vmatpush3.bf16.msra.mxu0 %v3749_v51  ;;  %3191 = vmatpush3.bf16.msra.mxu1 %v3750_v52  ;;  %v3127_v52 = vld [vmem:[#allocation13] ss:$0 sm:$0xff] }
 0x272   : > { %3170 = vmatprep.subr.bf16.mxu0 %v3751_v53  ;;  %3192 = vmatprep.subr.bf16.mxu1 %v3752_v54 }
 0x275   : > { %3171 = vmatpush3.bf16.msra.mxu0 %v3753_v55  ;;  %3193 = vmatpush3.bf16.msra.mxu1 %v3754_v56 }
 0x276   : > { %3172 = vmatprep.subr.bf16.mxu0 %v3755_v57  ;;  %3194 = vmatprep.subr.bf16.mxu1 %v3756_v58 }
 0x279   : > { %3173 = vmatpush3.bf16.msra.mxu0 %v3757_v59  ;;  %3195 = vmatpush3.bf16.msra.mxu1 %v3758_v60 }
 0x27a   : > { %3174 = vmatprep.subr.bf16.mxu0 %v3759_v61  ;;  %3196 = vmatprep.subr.bf16.mxu1 %v3760_v62 }
 0x27d   : > { %3175 = vmatpush3.bf16.msra.mxu0 %v3761_v63  ;;  %3197 = vmatpush3.bf16.msra.mxu1 %v3762_v42 }
 0x27e   : > { %3176 = vmatprep.subr.bf16.mxu0 %v3763_v0  ;;  %3198 = vmatprep.subr.bf16.mxu1 %v3764_v1 }
 0x281   : > { %3177 = vmatpush3.bf16.msra.mxu0 %v3765_v2  ;;  %3199 = vmatpush3.bf16.msra.mxu1 %v3766_v3 }
 0x282   : > { %3178 = vmatprep.subr.bf16.mxu0 %v3767_v4  ;;  %3200 = vmatprep.subr.bf16.mxu1 %v3768_v5 }
 0x285   : > { %3179 = vmatpush3.bf16.msra.mxu0 %v3769_v6  ;;  %3201 = vmatpush3.bf16.msra.mxu1 %v3770_v10 }
 0x286   : > { %3180 = vmatprep.subr.bf16.mxu0 %v3771_v13  ;;  %3202 = vmatprep.subr.bf16.mxu1 %v3772_v14 }
 0x289   : > { %3181 = vmatpush3.bf16.msra.mxu0 %v3773_v15  ;;  %3203 = vmatpush3.bf16.msra.mxu1 %v3774_v16 }
 0x28a   : > { %3182 = vmatprep.subr.bf16.mxu0 %v3775_v17  ;;  %3204 = vmatprep.subr.bf16.mxu1 %v3776_v18 }
 0x28d   : > { %3183 = vmatpush3.bf16.msra.mxu0 %v3777_v19  ;;  %3205 = vmatpush3.bf16.msra.mxu1 %v3778_v20 }
 0x343   : > { %v2247_v26 = vpop.f32.mrb[4].mxu0  ;;  %v2333_v27 = vpop.f32.mrb[4].mxu1 }
 0x344   : > { %v3220_v28 = vadd.f32 %v2247_v26, %v1513_v22  ;;  %v3224_v29 = vadd.f32 %v2333_v27, %v1521_v23  ;;  %v2249_v30 = vpop.f32.mrb[5].mxu0  ;;  %v2335_v31 = vpop.f32.mrb[5].mxu1 }
 0x345   : > { %v3221_v32 = vadd.f32 %v2249_v30, %v1517_v24  ;;  %v3225_v33 = vadd.f32 %v2335_v31, %v1525_v25  ;;  %v2251_v34 = vpop.f32.mrb[6].mxu0  ;;  %v2337_v35 = vpop.f32.mrb[6].mxu1 }
 0x346   : > { %v3222_v8 = vadd.f32 %v2251_v34, %v1513_v22  ;;  %v3226_v36 = vadd.f32 %v2337_v35, %v1521_v23  ;;  %v2253_v37 = vpop.f32.mrb[7].mxu0  ;;  %v2339_v9 = vpop.f32.mrb[7].mxu1  ;;  %v2342_v11 = vmax.f32 %v3220_v28, 0.0  ;;  %v2344_v7 = vmax.f32 %v3224_v29, 0.0 }
 0x347   : > { %v3223_v38 = vadd.f32 %v2253_v37, %v1517_v24  ;;  %v3227_v39 = vadd.f32 %v2339_v9, %v1525_v25  ;;  %v2343_v41 = vmax.f32 %v3221_v32, 0.0  ;;  %v2345_v43 = vmax.f32 %v3225_v33, 0.0 }
 0x348   : > { %v2346_v12 = vmax.f32 %v3222_v8, 0.0  ;;  %v2348_v40 = vmax.f32 %v3226_v36, 0.0 }
 0x349   : > { %v2347_v44 = vmax.f32 %v3223_v38, 0.0  ;;  %v2349_v45 = vmax.f32 %v3227_v39, 0.0 }
 0x34a   : > { %v2350_v46 = vpack.c.bf16 %v2346_v12, %v2342_v11  ;;  %v2352_v47 = vpack.c.bf16 %v2348_v40, %v2344_v7 }
 0x34b   : > { %v2351_v48 = vpack.c.bf16 %v2347_v44, %v2343_v41  ;;  %v2353_v49 = vpack.c.bf16 %v2349_v45, %v2345_v43 }
 0x34d   : > { %2649 = vmatprep.mubr.bf16.mxu0 %v2351_v48  ;;  %2690 = vmatprep.mubr.bf16.mxu1 %v2353_v49 }
 0x34e   : > { %2650 = vmatmul.mubr.bf16.vlgmr.msra.gmra.mrb[8].mxu0 %v2350_v46  ;;  %2691 = vmatmul.mubr.bf16.vlgmr.msra.gmra.mrb[8].mxu1 %v2352_v47 }
 0x421   : > { %v3184_v50 = vpop.f32.mrb[8].mxu0  ;;  %v3206_v51 = vpop.f32.mrb[8].mxu1 }
 0x422   : > { %v3185_v53 = vpop.f32.mrb[9].mxu0  ;;  %v3207_v54 = vpop.f32.mrb[9].mxu1 }
 0x423   : > { %v3186_v55 = vadd.f32 %v3185_v53, %v3184_v50  ;;  %v3208_v56 = vadd.f32 %v3207_v54, %v3206_v51  ;;  %v3187_v57 = vpop.f32.mrb[10].mxu0  ;;  %v3209_v58 = vpop.f32.mrb[10].mxu1 }
 0x424   : > { %v3188_v59 = vpop.f32.mrb[11].mxu0  ;;  %v3210_v60 = vpop.f32.mrb[11].mxu1 }
 0x425   : > { %v2652_v61 = vadd.f32 %v3186_v55, %v3127_v52  ;;  %v3189_v62 = vadd.f32 %v3188_v59, %v3187_v57  ;;  %v3211_v63 = vadd.f32 %v3210_v60, %v3209_v58 }
 0x427   : > { %v2693_v42 = vadd.f32 %v3208_v56, %v2652_v61  ;;  %v2655_v0 = vadd.f32 %v3189_v62, %v3127_v52 }
 0x429   : > { %2699 = vst [vmem:[%s378_s10] sm:$0xff] %v2693_v42  ;;  %v2696_v1 = vadd.f32 %v3211_v63, %v2655_v0 }
 0x42b   : > { %2700 = vst [vmem:[%s378_s10 + $0x8] sm:$0xff] %v2696_v1 }
 0x42c   : > { %3990 = shalt.err (!%p3987_p8)
}
 0x42d   : > { %s3991_s28 = scalar_lea.hbm %s4434_s22, 256  ;;  %s3995_s8 = scalar_lea.hbm %s4485_s7, 512 }
 0x42e   : > { %p3992_p4 = scmp.ne.s32.totalorder %s4434_s22, %s3991_s28  ;;  %p3996_p0 = scmp.lt.u32.totalorder %s4434_s22, %s4485_s7 }
 0x42f   : > { %p3997_p5 = scmp.lt.u32.totalorder %s3995_s8, %s3991_s28  ;;  %p3999_p6 = scmp.lt.u32.totalorder %s3991_s28, %s4434_s22 }
 0x430   : > { %p3993_p10 = pnand %p3992_p4, %p4511_p9 }
 0x431   : > { %p3998_p7 = por %p3997_p5, %p3996_p0 }
 0x432   : > { %p3994_p11 = pneg %p3993_p10 }
 0x433   : > { %p4000_p12 = por %p3999_p6, %p3998_p7 }
 0x435   : > { %p4001_p13 = pnand %p4000_p12, %p3994_p11 }
 0x437   : > { %4004 = shalt.err (!%p4001_p13)
}
 0x438   : > { %s4069_s15 = smov 128   ;;  %s4070_s19 = smov 8  }
 0x439   : > { %3270 = dma.vmem_to_hbm [thread:$0]  (%p4511_p9), %s4429_s16, 256, %s4434_s22, %s2702_s9, %s4069_s15, %s4069_s15, %s4070_s19  }
 0x43a PF: > { %s2730_s14 = sand.u32 1, %s4043_s24   ;;  %p4512_p1 = scmp.ne.s32.totalorder %s4500_s21, 0 }
 0x43b   : > { %p4513_p3 = scmp.ge.s32.totalorder %s4055_s27, 2  ;;  %s2731_s30 = scalar_lea.sflag [#allocation4], %s2730_s14 }
 0x43d   : > { %p3296_p2 = pnand %p4513_p3, %p4512_p1 }
 0x43f   : > { %4038 = dma.done.wait (!%p3296_p2), %s2731_s30, 256  }
 0x440   : > { %4040 = vsyncadd (!%p3296_p2), %s2731_s30, 4294967040  ;;  %p23_p8 = scmp.ge.s32.totalorder %s4293_s11, 4   ;;  %s4514_s24 = smov %s4047_s25 }
 0x441   : > { %s4515_s25 = smov %s4051_s26  ;;  %s4516_s26 = smov %s4304_s18 }
 0x442   : > { %s4517_s27 = smov %s4293_s11  ;;  %25 = sbr.rel (!%p23_p8) target bundleno = 10 (0xa), region = 117 }
 0x449   :  { %2736 = vsyncpa [#allocation3], 1 }
 0x44a   :  { %2738 = vsyncpa [#allocation3 + $0x1], 1 }
 0x44b   :  { %2739 = vsyncpa [#allocation6], 1 }
 0x44c   :  { %2740 = vsyncpa [#allocation9], 1 }
 0x44d   :  { %2741 = vsyncpa [#allocation12], 1 }
 0x44e   :  { %2742 = vsyncpa [#allocation4], 1 }
 0x44f   :  { %2744 = vsyncpa [#allocation4 + $0x1], 1 }

</bundles_post_ra>
